<compile_context>
chip_gen: v5e
topology: v5e:2x2
jax: 0.10.0
libtpu: 0.0.40
codegen_flags: <defaults>
</compile_context>

<pallas_src>
import functools

import jax
import jax.numpy as jnp
from jax.experimental import pallas as pl
from jax.experimental.pallas import tpu as pltpu


def _round_up(x, m):
    return ((x + m - 1) // m) * m


# ----------------------------------------------------------------------------
# Kernel 1: conv1 as a single-block matmul + bias + ReLU (no accumulator).
# ----------------------------------------------------------------------------
def _conv_matmul_kernel(p_ref, w_ref, b_ref, o_ref):
    # Whole problem fits one block: one MXU dot, f32 epilogue, direct store.
    h = jnp.dot(p_ref[...], w_ref[...], preferred_element_type=jnp.float32)
    o_ref[...] = jnp.maximum(h + b_ref[...], 0.0).astype(o_ref.dtype)


def conv_matmul(patches, w, b, out_dtype=jnp.bfloat16):
    """relu(patches @ w + b).  patches:(M,K) bf16, w:(K,Cout) bf16, b:(1,Cout) f32."""
    M, K = patches.shape
    Cout = w.shape[1]
    return pl.pallas_call(
        _conv_matmul_kernel,
        out_shape=jax.ShapeDtypeStruct((M, Cout), out_dtype),
        grid=(1,),
        in_specs=[
            pl.BlockSpec((M, K), lambda i: (0, 0)),
            pl.BlockSpec((K, Cout), lambda i: (0, 0)),
            pl.BlockSpec((1, Cout), lambda i: (0, 0)),
        ],
        out_specs=pl.BlockSpec((M, Cout), lambda i: (0, 0)),
        compiler_params=pltpu.CompilerParams(
            dimension_semantics=("arbitrary",),
            vmem_limit_bytes=32 * 1024 * 1024,
        ),
    )(patches, w, b)


# ----------------------------------------------------------------------------
# Kernel 2 (fused tail): conv2 matmul + GAP + proj(->2048, ReLU) + fc(2048->V)
#   grid = (batch, V-tiles), both parallel (v7x megacore), fc weight V-tiled.
# ----------------------------------------------------------------------------
def _fused_tail_kernel(p2_ref, w2_ref, b2_ref, pw_ref, pb_ref,
                       fw_ref, fb_ref, o_ref):
    # One batch sample and one V-tile per grid step; everything stays in VMEM.
    p2 = p2_ref[0]                                                   # (HW2, K2) bf16
    h2 = jnp.dot(p2, w2_ref[...], preferred_element_type=jnp.float32)
    h2 = jnp.maximum(h2 + b2_ref[...], 0.0)                          # (HW2, C2) f32
    # Global average pool: the 1/HW2 scale is folded into pw at init.
    feat = jnp.sum(h2, axis=0, keepdims=True).astype(jnp.bfloat16)   # (1, C2)
    h3 = jnp.dot(feat, pw_ref[...], preferred_element_type=jnp.float32)
    h3 = jnp.maximum(h3 + pb_ref[...], 0.0).astype(jnp.bfloat16)     # (1, 2048)
    out = jnp.dot(h3, fw_ref[...], preferred_element_type=jnp.float32)
    o_ref[0] = out + fb_ref[...]                                     # (1, tv) f32


def fused_conv2_gap_proj_fc(p2, w2, b2, pw, pb, fw, fb, *, tv):
    """p2:(N,HW2,K2) bf16 -> conv2 -> GAP -> proj -> fc, returns (N, Vp) f32."""
    N, HW2, K2 = p2.shape
    C2 = w2.shape[1]
    D = pw.shape[1]
    Vp = fw.shape[1]
    assert Vp % tv == 0, (Vp, tv)
    grid = (N, Vp // tv)
    out = pl.pallas_call(
        _fused_tail_kernel,
        out_shape=jax.ShapeDtypeStruct((N, 1, Vp), jnp.float32),
        grid=grid,
        in_specs=[
            pl.BlockSpec((1, HW2, K2), lambda b, j: (b, 0, 0)),
            pl.BlockSpec((K2, C2), lambda b, j: (0, 0)),
            pl.BlockSpec((1, C2), lambda b, j: (0, 0)),
            pl.BlockSpec((C2, D), lambda b, j: (0, 0)),
            pl.BlockSpec((1, D), lambda b, j: (0, 0)),
            pl.BlockSpec((D, tv), lambda b, j: (0, j)),
            pl.BlockSpec((1, tv), lambda b, j: (0, j)),
        ],
        out_specs=pl.BlockSpec((1, 1, tv), lambda b, j: (b, 0, j)),
        compiler_params=pltpu.CompilerParams(
            dimension_semantics=("parallel", "parallel"),
            vmem_limit_bytes=32 * 1024 * 1024,
        ),
        cost_estimate=pl.CostEstimate(
            flops=2 * N * (HW2 * K2 * C2 + C2 * D + D * Vp),
            bytes_accessed=(N * HW2 * K2 * 2 + K2 * C2 * 2 + C2 * D * 2
                            + D * Vp * 2 + N * Vp * 4),
            transcendentals=0,
        ),
    )(p2, w2, b2, pw, pb, fw, fb)
    return out.reshape(N, Vp)


def _pick_v_tile(vp):
    # 256/512-wide tiles for v6e/v7x-friendly MXU cadence when Vp allows it.
    for tv in (512, 256, 128):
        if vp % tv == 0:
            return tv
    return 128


# ----------------------------------------------------------------------------
# Wrapper-side im2col (tiny, on bf16 NHWC activations; one XLA gather each).
# ----------------------------------------------------------------------------
def _im2col_nhwc(x, k, stride):
    """(N,H,W,C) -> (N,Ho,Wo,k*k*C) with (kh, kw, cin) channel-fastest order."""
    N, H, W, C = x.shape
    Ho = (H - k) // stride + 1
    Wo = (W - k) // stride + 1
    cols = []
    for i in range(k):
        for j in range(k):
            cols.append(x[:, i:i + stride * Ho:stride,
                          j:j + stride * Wo:stride, :])
    return jnp.concatenate(cols, axis=-1)


# ----------------------------------------------------------------------------
# Parameters: everything pre-transposed / pre-flattened / pre-cast / pre-padded.
# ----------------------------------------------------------------------------
def _conv_weight_to_mat(w):
    # PyTorch (Cout, Cin, KH, KW) -> im2col matrix (KH*KW*Cin, Cout).
    cout, cin, kh, kw = w.shape
    return w.transpose(2, 3, 1, 0).reshape(kh * kw * cin, cout)


def init_params(key, vector_size, *, input_hw=32):
    k = jax.random.split(key, 4)
    # Synthetic stand-in for the pretrained Inception-v3 trunk (see TODO).
    conv1_w = 0.1 * jax.random.normal(k[0], (32, 3, 3, 3), jnp.float32)
    conv2_w = 0.1 * jax.random.normal(k[1], (64, 32, 3, 3), jnp.float32)
    proj_w = 0.05 * jax.random.normal(k[2], (64, 2048), jnp.float32)
    fc_w = 0.01 * jax.random.normal(k[3], (2048, vector_size), jnp.float32)

    # Trunk geometry implied by two 3x3 stride-2 VALID convs on input_hw.
    h1 = (input_hw - 3) // 2 + 1
    h2 = (h1 - 3) // 2 + 1
    gap_hw = h2 * h2

    vp = _round_up(vector_size, 128)      # lane-dense fc output slab
    return {
        "conv1_w": _conv_weight_to_mat(conv1_w).astype(jnp.bfloat16),   # (27, 32)
        "conv1_b": jnp.zeros((1, 32), jnp.float32),
        "conv2_w": _conv_weight_to_mat(conv2_w).astype(jnp.bfloat16),   # (288, 64)
        "conv2_b": jnp.zeros((1, 64), jnp.float32),
        # 1/HW GAP scale folded into the projection weight (pool = plain sum).
        "proj_w": (proj_w / float(gap_hw)).astype(jnp.bfloat16),        # (64, 2048)
        "proj_b": jnp.zeros((1, 2048), jnp.float32),
        # Model.fc -- exact PyTorch init: weight ~ N(0, 0.01), bias = 0,
        # stored pre-transposed (2048, V) and zero-padded to Vp lanes.
        "fc_w": jnp.pad(fc_w, ((0, 0), (0, vp - vector_size))).astype(jnp.bfloat16),
        "fc_b": jnp.zeros((1, vp), jnp.float32),
    }


# ----------------------------------------------------------------------------
# Forward pass
# ----------------------------------------------------------------------------
def model_forward(params, x_nchw, *, vector_size):
    # Single NCHW -> NHWC conversion + bf16 cast at the model boundary.
    x = jnp.transpose(x_nchw, (0, 2, 3, 1)).astype(jnp.bfloat16)
    N = x.shape[0]

    # conv1: 3x3 stride-2 VALID.  Patches built on the raw 6 KB input.
    p1 = _im2col_nhwc(x, 3, 2)                                # (N, H1, W1, 27)
    _, H1, W1, K1 = p1.shape
    h1 = conv_matmul(p1.reshape(N * H1 * W1, K1),
                     params["conv1_w"], params["conv1_b"])    # (N*H1*W1, 32)
    h1 = h1.reshape(N, H1, W1, 32)

    # conv2 patches (~56 KB bf16) feed the single fused tail kernel.
    p2 = _im2col_nhwc(h1, 3, 2)                               # (N, H2, W2, 288)
    _, H2, W2, K2 = p2.shape
    p2 = p2.reshape(N, H2 * W2, K2)

    vp = params["fc_w"].shape[1]
    out = fused_conv2_gap_proj_fc(
        p2, params["conv2_w"], params["conv2_b"],
        params["proj_w"], params["proj_b"],
        params["fc_w"], params["fc_b"],
        tv=_pick_v_tile(vp))
    return out[:, :vector_size]                               # (N, vector_size)


if __name__ == "__main__":
    vector_size = 16
    key = jax.random.PRNGKey(0)
    pkey, xkey = jax.random.split(key)
    params = init_params(pkey, vector_size, input_hw=32)
    # Small synthetic input, NCHW like PyTorch.
    X = jax.random.normal(xkey, (2, 3, 32, 32), jnp.float32)
    fwd = jax.jit(functools.partial(model_forward, vector_size=vector_size))
    y = fwd(params, X)
    y = jax.block_until_ready(y)
    assert y.shape == (2, vector_size), y.shape
    assert bool(jnp.all(jnp.isfinite(y)))
    print("KERNEL_OK")
</pallas_src>

<mosaic_0001>
module attributes {stable_mosaic.version = 11 : i64} {
  func.func @_conv_matmul_kernel(%arg0: i32, %arg1: memref<450x27xbf16, #tpu.memory_space<vmem>>, %arg2: memref<27x32xbf16, #tpu.memory_space<vmem>>, %arg3: memref<1x32xf32, #tpu.memory_space<vmem>>, %arg4: memref<450x32xbf16, #tpu.memory_space<vmem>>) attributes {dimension_semantics = [#tpu.dimension_semantics<arbitrary>], iteration_bounds = array<i64: 1>, scalar_prefetch = 0 : i64, scratch_operands = 0 : i64, tpu.core_type = #tpu.core_type<tc>, window_params = [{pipeline_mode = #tpu.pipeline_mode<synchronous>, transform_indices = @transform_0, window_bounds = array<i64: 450, 27>}, {pipeline_mode = #tpu.pipeline_mode<synchronous>, transform_indices = @transform_1, window_bounds = array<i64: 27, 32>}, {pipeline_mode = #tpu.pipeline_mode<synchronous>, transform_indices = @transform_2, window_bounds = array<i64: 1, 32>}, {pipeline_mode = #tpu.pipeline_mode<synchronous>, transform_indices = @transform_3, window_bounds = array<i64: 450, 32>}]} {
    %c0 = arith.constant 0 : index
    %c0_0 = arith.constant 0 : index
    %0 = vector.load %arg1[%c0, %c0_0] : memref<450x27xbf16, #tpu.memory_space<vmem>>, vector<450x27xbf16>
    %c0_1 = arith.constant 0 : index
    %c0_2 = arith.constant 0 : index
    %1 = vector.load %arg2[%c0_1, %c0_2] : memref<27x32xbf16, #tpu.memory_space<vmem>>, vector<27x32xbf16>
    %cst = arith.constant dense<0.000000e+00> : vector<450x32xf32>
    %2 = tpu.matmul %0, %1, %cst {dimension_numbers = #tpu.dot_dimension_numbers<[1], [0], [0], [1], [0, 0, 1, 1], [], []>} : vector<450x27xbf16>, vector<27x32xbf16>, vector<450x32xf32> -> vector<450x32xf32>
    %c0_3 = arith.constant 0 : index
    %c0_4 = arith.constant 0 : index
    %3 = vector.load %arg3[%c0_3, %c0_4] : memref<1x32xf32, #tpu.memory_space<vmem>>, vector<1x32xf32>
    %4 = vector.broadcast %3 : vector<1x32xf32> to vector<450x32xf32>
    %5 = arith.addf %2, %4 : vector<450x32xf32>
    %cst_5 = arith.constant 0.000000e+00 : f32
    %6 = vector.broadcast %cst_5 : f32 to vector<450x32xf32>
    %7 = arith.maximumf %5, %6 : vector<450x32xf32>
    %8 = arith.truncf %7 : vector<450x32xf32> to vector<450x32xbf16>
    %c0_6 = arith.constant 0 : index
    %c0_7 = arith.constant 0 : index
    %9 = vector.load %arg4[%c0_6, %c0_7] : memref<450x32xbf16, #tpu.memory_space<vmem>>, vector<450x32xbf16>
    tpu.vector_store %arg4[%c0_6, %c0_7], %8 {strides = array<i32>} : memref<450x32xbf16, #tpu.memory_space<vmem>>, vector<450x32xbf16>,
    return
  }
  func.func @transform_0(%arg0: i32) -> (i32, i32) {
    %c0_i32 = arith.constant 0 : i32
    %c0_i32_0 = arith.constant 0 : i32
    %c0_i32_1 = arith.constant 0 : i32
    return %c0_i32, %c0_i32_0 : i32, i32
  }
  func.func @transform_1(%arg0: i32) -> (i32, i32) {
    %c0_i32 = arith.constant 0 : i32
    %c0_i32_0 = arith.constant 0 : i32
    %c0_i32_1 = arith.constant 0 : i32
    return %c0_i32, %c0_i32_0 : i32, i32
  }
  func.func @transform_2(%arg0: i32) -> (i32, i32) {
    %c0_i32 = arith.constant 0 : i32
    %c0_i32_0 = arith.constant 0 : i32
    %c0_i32_1 = arith.constant 0 : i32
    return %c0_i32, %c0_i32_0 : i32, i32
  }
  func.func @transform_3(%arg0: i32) -> (i32, i32) {
    %c0_i32 = arith.constant 0 : i32
    %c0_i32_0 = arith.constant 0 : i32
    %c0_i32_1 = arith.constant 0 : i32
    return %c0_i32, %c0_i32_0 : i32, i32
  }
}

module attributes {stable_mosaic.version = 11 : i64} {
  func.func @_fused_tail_kernel(%arg0: i32, %arg1: i32, %arg2: memref<1x49x288xbf16, #tpu.memory_space<vmem>>, %arg3: memref<288x64xbf16, #tpu.memory_space<vmem>>, %arg4: memref<1x64xf32, #tpu.memory_space<vmem>>, %arg5: memref<64x2048xbf16, #tpu.memory_space<vmem>>, %arg6: memref<1x2048xf32, #tpu.memory_space<vmem>>, %arg7: memref<2048x128xbf16, #tpu.memory_space<vmem>>, %arg8: memref<1x128xf32, #tpu.memory_space<vmem>>, %arg9: memref<1x1x128xf32, #tpu.memory_space<vmem>>) attributes {dimension_semantics = [#tpu.dimension_semantics<parallel>, #tpu.dimension_semantics<parallel>], iteration_bounds = array<i64: 2, 1>, scalar_prefetch = 0 : i64, scratch_operands = 0 : i64, tpu.core_type = #tpu.core_type<tc>, window_params = [{transform_indices = @transform_0, window_bounds = array<i64: 1, 49, 288>}, {pipeline_mode = #tpu.pipeline_mode<synchronous>, transform_indices = @transform_1, window_bounds = array<i64: 288, 64>}, {pipeline_mode = #tpu.pipeline_mode<synchronous>, transform_indices = @transform_2, window_bounds = array<i64: 1, 64>}, {pipeline_mode = #tpu.pipeline_mode<synchronous>, transform_indices = @transform_3, window_bounds = array<i64: 64, 2048>}, {pipeline_mode = #tpu.pipeline_mode<synchronous>, transform_indices = @transform_4, window_bounds = array<i64: 1, 2048>}, {transform_indices = @transform_5, window_bounds = array<i64: 2048, 128>}, {transform_indices = @transform_6, window_bounds = array<i64: 1, 128>}, {transform_indices = @transform_7, window_bounds = array<i64: 1, 1, 128>}]} {
    %c0 = arith.constant 0 : index
    %c0_0 = arith.constant 0 : index
    %c0_1 = arith.constant 0 : index
    %0 = vector.load %arg2[%c0, %c0_0, %c0_1] : memref<1x49x288xbf16, #tpu.memory_space<vmem>>, vector<1x49x288xbf16>
    %1 = vector.shape_cast %0 : vector<1x49x288xbf16> to vector<49x288xbf16>
    %c0_2 = arith.constant 0 : index
    %c0_3 = arith.constant 0 : index
    %2 = vector.load %arg3[%c0_2, %c0_3] : memref<288x64xbf16, #tpu.memory_space<vmem>>, vector<288x64xbf16>
    %cst = arith.constant dense<0.000000e+00> : vector<49x64xf32>
    %3 = tpu.matmul %1, %2, %cst {dimension_numbers = #tpu.dot_dimension_numbers<[1], [0], [0], [1], [0, 0, 1, 1], [], []>} : vector<49x288xbf16>, vector<288x64xbf16>, vector<49x64xf32> -> vector<49x64xf32>
    %c0_4 = arith.constant 0 : index
    %c0_5 = arith.constant 0 : index
    %4 = vector.load %arg4[%c0_4, %c0_5] : memref<1x64xf32, #tpu.memory_space<vmem>>, vector<1x64xf32>
    %5 = vector.broadcast %4 : vector<1x64xf32> to vector<49x64xf32>
    %6 = arith.addf %3, %5 : vector<49x64xf32>
    %cst_6 = arith.constant 0.000000e+00 : f32
    %7 = vector.broadcast %cst_6 : f32 to vector<49x64xf32>
    %8 = arith.maximumf %6, %7 : vector<49x64xf32>
    %cst_7 = arith.constant dense<0.000000e+00> : vector<64xf32>
    %9 = vector.multi_reduction <add>, %8, %cst_7 [0] : vector<49x64xf32> to vector<64xf32>
    %10 = vector.shape_cast %9 : vector<64xf32> to vector<1x64xf32>
    %11 = arith.truncf %10 : vector<1x64xf32> to vector<1x64xbf16>
    %c0_8 = arith.constant 0 : index
    %c0_9 = arith.constant 0 : index
    %12 = vector.load %arg5[%c0_8, %c0_9] : memref<64x2048xbf16, #tpu.memory_space<vmem>>, vector<64x2048xbf16>
    %cst_10 = arith.constant dense<0.000000e+00> : vector<1x2048xf32>
    %13 = tpu.matmul %11, %12, %cst_10 {dimension_numbers = #tpu.dot_dimension_numbers<[1], [0], [0], [1], [0, 0, 1, 1], [], []>} : vector<1x64xbf16>, vector<64x2048xbf16>, vector<1x2048xf32> -> vector<1x2048xf32>
    %c0_11 = arith.constant 0 : index
    %c0_12 = arith.constant 0 : index
    %14 = vector.load %arg6[%c0_11, %c0_12] : memref<1x2048xf32, #tpu.memory_space<vmem>>, vector<1x2048xf32>
    %15 = arith.addf %13, %14 : vector<1x2048xf32>
    %cst_13 = arith.constant 0.000000e+00 : f32
    %16 = vector.broadcast %cst_13 : f32 to vector<1x2048xf32>
    %17 = arith.maximumf %15, %16 : vector<1x2048xf32>
    %18 = arith.truncf %17 : vector<1x2048xf32> to vector<1x2048xbf16>
    %c0_14 = arith.constant 0 : index
    %c0_15 = arith.constant 0 : index
    %19 = vector.load %arg7[%c0_14, %c0_15] : memref<2048x128xbf16, #tpu.memory_space<vmem>>, vector<2048x128xbf16>
    %cst_16 = arith.constant dense<0.000000e+00> : vector<1x128xf32>
    %20 = tpu.matmul %18, %19, %cst_16 {dimension_numbers = #tpu.dot_dimension_numbers<[1], [0], [0], [1], [0, 0, 1, 1], [], []>} : vector<1x2048xbf16>, vector<2048x128xbf16>, vector<1x128xf32> -> vector<1x128xf32>
    %c0_17 = arith.constant 0 : index
    %c0_18 = arith.constant 0 : index
    %21 = vector.load %arg8[%c0_17, %c0_18] : memref<1x128xf32, #tpu.memory_space<vmem>>, vector<1x128xf32>
    %22 = arith.addf %20, %21 : vector<1x128xf32>
    %c0_19 = arith.constant 0 : index
    %c0_20 = arith.constant 0 : index
    %c0_21 = arith.constant 0 : index
    %23 = vector.load %arg9[%c0_19, %c0_20, %c0_21] : memref<1x1x128xf32, #tpu.memory_space<vmem>>, vector<1x1x128xf32>
    %24 = vector.shape_cast %23 : vector<1x1x128xf32> to vector<1x128xf32>
    %25 = vector.shape_cast %22 : vector<1x128xf32> to vector<1x1x128xf32>
    tpu.vector_store %arg9[%c0_19, %c0_20, %c0_21], %25 {strides = array<i32>} : memref<1x1x128xf32, #tpu.memory_space<vmem>>, vector<1x1x128xf32>,
    return
  }
  func.func @transform_0(%arg0: i32, %arg1: i32) -> (i32, i32, i32) {
    %c0_i32 = arith.constant 0 : i32
    %c0_i32_0 = arith.constant 0 : i32
    %c0_i32_1 = arith.constant 0 : i32
    return %arg0, %c0_i32, %c0_i32_0 : i32, i32, i32
  }
  func.func @transform_1(%arg0: i32, %arg1: i32) -> (i32, i32) {
    %c0_i32 = arith.constant 0 : i32
    %c0_i32_0 = arith.constant 0 : i32
    %c0_i32_1 = arith.constant 0 : i32
    return %c0_i32, %c0_i32_0 : i32, i32
  }
  func.func @transform_2(%arg0: i32, %arg1: i32) -> (i32, i32) {
    %c0_i32 = arith.constant 0 : i32
    %c0_i32_0 = arith.constant 0 : i32
    %c0_i32_1 = arith.constant 0 : i32
    return %c0_i32, %c0_i32_0 : i32, i32
  }
  func.func @transform_3(%arg0: i32, %arg1: i32) -> (i32, i32) {
    %c0_i32 = arith.constant 0 : i32
    %c0_i32_0 = arith.constant 0 : i32
    %c0_i32_1 = arith.constant 0 : i32
    return %c0_i32, %c0_i32_0 : i32, i32
  }
  func.func @transform_4(%arg0: i32, %arg1: i32) -> (i32, i32) {
    %c0_i32 = arith.constant 0 : i32
    %c0_i32_0 = arith.constant 0 : i32
    %c0_i32_1 = arith.constant 0 : i32
    return %c0_i32, %c0_i32_0 : i32, i32
  }
  func.func @transform_5(%arg0: i32, %arg1: i32) -> (i32, i32) {
    %c0_i32 = arith.constant 0 : i32
    %c0_i32_0 = arith.constant 0 : i32
    return %c0_i32, %arg1 : i32, i32
  }
  func.func @transform_6(%arg0: i32, %arg1: i32) -> (i32, i32) {
    %c0_i32 = arith.constant 0 : i32
    %c0_i32_0 = arith.constant 0 : i32
    return %c0_i32, %arg1 : i32, i32
  }
  func.func @transform_7(%arg0: i32, %arg1: i32) -> (i32, i32, i32) {
    %c0_i32 = arith.constant 0 : i32
    %c0_i32_0 = arith.constant 0 : i32
    return %arg0, %c0_i32, %arg1 : i32, i32, i32
  }
}

</mosaic_0001>

<bundles_post_ra>
// kernel: model_forward.2
= control target key start
LH: loop header
LB: loop body
LE: loop exit
PB: predicated region body
PF: predicated region fallthrough
CT: control target
= control target key end

     0   :  { %vm322_vm0 = vcmask 1044480   ;;  %vm323_vm1 = vcmask 1045504   ;;  %v846_v2 = vmov 65535   ;;  %vm234_vm2 = vcmask 220160   ;;  %s1281_s1 = inlined_call_operand.vmem [shape: bf16[27,32], index: 1, kind: input, shape index: {}]   ;;  %s1282_s2 = inlined_call_operand.vmem [shape: f32[1,32], index: 2, kind: input, shape index: {}]   ;;  %s1283_s0 = inlined_call_operand.vmem [shape: bf16[450,27], index: 0, kind: input, shape index: {}]   ;;  %s1284_s3 = inlined_call_operand.vmem [shape: bf16[450,32], index: 3, kind: output, shape index: {}]  }
   0x1   :  { %v777_v0 = vld [vmem:[%s1281_s1 + $0x8] sm:$0xf]  ;;  %v837_v1 = vld [vmem:[%s1281_s1 + $0x8] sm:$0x30]  ;;  %v324_v3 = vsel %vm322_vm0, 4294967295, %v846_v2  ;;  %v836_v7 = vld [vmem:[%s1281_s1] sm:$0xff] }
   0x2   :  { %v778_v4 = vor.u32 %v837_v1, %v777_v0  ;;  %v325_v5 = vsel %vm323_vm1, %v324_v3, 0  ;;  %v815_v8 = vld [vmem:[%s1283_s0 + $0x38] sm:$0xff]  ;;  %v808_v10 = vld [vmem:[%s1283_s0] sm:$0xff]  ;;  %v809_v14 = vld [vmem:[%s1283_s0 + $0x8] sm:$0xff]  ;;  %vm596_vm3 = vcmask 257024   ;;  %vm653_vm4 = vcmask 253952  }
   0x3   :  { %v823_v9 = vld [vmem:[%s1283_s0 + $0x78] sm:$0xff]  ;;  %v816_v12 = vld [vmem:[%s1283_s0 + $0x40] sm:$0xff]  ;;  %v817_v16 = vld [vmem:[%s1283_s0 + $0x48] sm:$0xff] }
   0x4   :  { %v327_v6 = vand.u32 %v778_v4, %v325_v5  ;;  %v831_v11 = vld [vmem:[%s1283_s0 + $0xb8] sm:$0xff]  ;;  %v824_v13 = vld [vmem:[%s1283_s0 + $0x80] sm:$0xff]  ;;  %v825_v17 = vld [vmem:[%s1283_s0 + $0x88] sm:$0xff] }
   0x5   :  { %v832_v15 = vld [vmem:[%s1283_s0 + $0xc0] sm:$0xff]  ;;  %v810_v18 = vld [vmem:[%s1283_s0 + $0x10] sm:$0xff]  ;;  %v833_v19 = vld [vmem:[%s1283_s0 + $0xc8] sm:$0xff] }
   0x6   :  { %838 = vmatpush.bf16.msra.mxu1 %v327_v6  ;;  %839 = vmatpush.bf16.msra.mxu2 %v327_v6  ;;  %v818_v20 = vld [vmem:[%s1283_s0 + $0x50] sm:$0xff]  ;;  %v811_v22 = vld [vmem:[%s1283_s0 + $0x18] sm:$0xff]  ;;  %v812_v26 = vld [vmem:[%s1283_s0 + $0x20] sm:$0xff] }
   0x7   :  { %335 = vmatpush.bf16.msra.mxu0 %v327_v6  ;;  %840 = vmatpush.bf16.msra.mxu3 %v327_v6  ;;  %v826_v21 = vld [vmem:[%s1283_s0 + $0x90] sm:$0xff]  ;;  %v819_v24 = vld [vmem:[%s1283_s0 + $0x58] sm:$0xff]  ;;  %v71_v28 = vld [vmem:[%s1283_s0 + $0xe0] sm:$0x1] }
   0x8   :  { %v834_v23 = vld [vmem:[%s1283_s0 + $0xd0] sm:$0xff]  ;;  %v827_v25 = vld [vmem:[%s1283_s0 + $0x98] sm:$0xff]  ;;  %v193_v29 = vunpack.c.l.b16 %v71_v28  ;;  %v820_v30 = vld [vmem:[%s1283_s0 + $0x60] sm:$0xff] }
   0x9   :  { %v835_v27 = vld [vmem:[%s1283_s0 + $0xd8] sm:$0xff]  ;;  %v828_v31 = vld [vmem:[%s1283_s0 + $0xa0] sm:$0xff]  ;;  %v813_v32 = vld [vmem:[%s1283_s0 + $0x28] sm:$0xff] }
   0xa   :  { %841 = vmatpush.bf16.msra.mxu1 %v836_v7  ;;  %842 = vmatpush.bf16.msra.mxu2 %v836_v7  ;;  %v222_v33 = vpack.c.b16 %v193_v29, %v193_v29  ;;  %v821_v34 = vld [vmem:[%s1283_s0 + $0x68] sm:$0xff]  ;;  %v814_v36 = vld [vmem:[%s1283_s0 + $0x30] sm:$0xff]  ;;  %v995_v39 = vld [vmem:[%s1282_s2] ss:$0 sm:$0xff] }
   0xb   :  { %336 = vmatpush.bf16.msra.mxu0 %v836_v7  ;;  %843 = vmatpush.bf16.msra.mxu3 %v836_v7  ;;  %v829_v35 = vld [vmem:[%s1283_s0 + $0xa8] sm:$0xff]  ;;  %v822_v37 = vld [vmem:[%s1283_s0 + $0x70] sm:$0xff] }
   0xc   :  { %v830_v38 = vld [vmem:[%s1283_s0 + $0xb0] sm:$0xff] }
   0xd   :  { %786 = vmatmul.msk.bf16.vlgmr.msra.gmra.mxu1 %vm234_vm2, %v815_v8  ;;  %794 = vmatmul.msk.bf16.vlgmr.msra.gmra.mxu2 %vm234_vm2, %v823_v9 }
   0xe   :  { %779 = vmatmul.msk.bf16.vlgmr.msra.gmra.mxu0 %vm234_vm2, %v808_v10  ;;  %802 = vmatmul.msk.bf16.vlgmr.msra.gmra.mxu3 %vm234_vm2, %v831_v11 }
  0x1d   :  { %787 = vmatmul.msk.bf16.gmra.mxu1 %vm234_vm2, %v816_v12  ;;  %795 = vmatmul.msk.bf16.gmra.mxu2 %vm234_vm2, %v824_v13 }
  0x1e   :  { %780 = vmatmul.msk.bf16.gmra.mxu0 %vm234_vm2, %v809_v14  ;;  %803 = vmatmul.msk.bf16.gmra.mxu3 %vm234_vm2, %v832_v15 }
  0x2d   :  { %788 = vmatmul.msk.bf16.gmra.mxu1 %vm234_vm2, %v817_v16  ;;  %796 = vmatmul.msk.bf16.gmra.mxu2 %vm234_vm2, %v825_v17 }
  0x2e   :  { %781 = vmatmul.msk.bf16.gmra.mxu0 %vm234_vm2, %v810_v18  ;;  %804 = vmatmul.msk.bf16.gmra.mxu3 %vm234_vm2, %v833_v19 }
  0x3d   :  { %789 = vmatmul.msk.bf16.gmra.mxu1 %vm234_vm2, %v818_v20  ;;  %797 = vmatmul.msk.bf16.gmra.mxu2 %vm234_vm2, %v826_v21 }
  0x3e   :  { %782 = vmatmul.msk.bf16.gmra.mxu0 %vm234_vm2, %v811_v22  ;;  %805 = vmatmul.msk.bf16.gmra.mxu3 %vm234_vm2, %v834_v23 }
  0x4d   :  { %790 = vmatmul.msk.bf16.gmra.mxu1 %vm234_vm2, %v819_v24  ;;  %798 = vmatmul.msk.bf16.gmra.mxu2 %vm234_vm2, %v827_v25 }
  0x4e   :  { %783 = vmatmul.msk.bf16.gmra.mxu0 %vm234_vm2, %v812_v26  ;;  %806 = vmatmul.msk.bf16.gmra.mxu3 %vm234_vm2, %v835_v27 }
  0x5d   :  { %791 = vmatmul.msk.bf16.gmra.mxu1 %vm234_vm2, %v820_v30  ;;  %799 = vmatmul.msk.bf16.gmra.mxu2 %vm234_vm2, %v828_v31 }
  0x5e   :  { %784 = vmatmul.msk.bf16.gmra.mxu0 %vm234_vm2, %v813_v32  ;;  %807 = vmatmul.msk.bf16.gmra.mxu3 %vm234_vm2, %v222_v33 }
  0x6d   :  { %792 = vmatmul.msk.bf16.gmra.mxu1 %vm234_vm2, %v821_v34  ;;  %800 = vmatmul.msk.bf16.gmra.mxu2 %vm234_vm2, %v829_v35 }
  0x6e   :  { %785 = vmatmul.msk.bf16.gmra.mxu0 %vm234_vm2, %v814_v36 }
  0x7d   :  { %793 = vmatmul.msk.bf16.gmra.mxu1 %vm234_vm2, %v822_v37  ;;  %801 = vmatmul.msk.bf16.gmra.mxu2 %vm234_vm2, %v830_v38 }
  0x8a   :  { %v373_v40 = vpop.f32.mrf.mxu1 }
  0x8b   :  { %v374_v41 = vadd.f32 %v995_v39, %v373_v40  ;;  %v338_v42 = vpop.f32.mrf.mxu0 }
  0x8c   :  { %v339_v43 = vadd.f32 %v995_v39, %v338_v42 }
  0x8d   :  { %v496_v44 = vmax.f32 %v374_v41, 0.0 }
  0x8e   :  { %v482_v45 = vmax.f32 %v339_v43, 0.0 }
  0x8f   :  { %v553_v46 = vpack.c.bf16 %v496_v44, %v496_v44 }
  0x90   :  { %v413_v47 = vpop.f32.mrf.mxu2  ;;  %v539_v48 = vpack.c.bf16 %v482_v45, %v482_v45 }
  0x91   :  { %611 = vst.msk [vmem:[%s1284_s3 + $0x38] sm:$0xf] %vm596_vm3, %v553_v46  ;;  %v414_v49 = vadd.f32 %v995_v39, %v413_v47  ;;  %v453_v50 = vpop.f32.mrf.mxu3 }
  0x92   :  { %v375_v51 = vpop.f32.mrf.mxu1  ;;  %597 = vst.msk [vmem:[%s1284_s3] sm:$0xf] %vm596_vm3, %v539_v48  ;;  %v454_v52 = vadd.f32 %v995_v39, %v453_v50 }
  0x93   :  { %v512_v53 = vmax.f32 %v414_v49, 0.0  ;;  %v376_v54 = vadd.f32 %v995_v39, %v375_v51  ;;  %v340_v55 = vpop.f32.mrf.mxu0 }
  0x94   :  { %v341_v56 = vadd.f32 %v995_v39, %v340_v55  ;;  %v528_v57 = vmax.f32 %v454_v52, 0.0 }
  0x95   :  { %v569_v58 = vpack.c.bf16 %v512_v53, %v512_v53  ;;  %v497_v59 = vmax.f32 %v376_v54, 0.0 }
  0x96   :  { %v483_v60 = vmax.f32 %v341_v56, 0.0  ;;  %v585_v61 = vpack.c.bf16 %v528_v57, %v528_v57 }
  0x97   :  { %627 = vst.msk [vmem:[%s1284_s3 + $0x78] sm:$0xf] %vm596_vm3, %v569_v58  ;;  %v554_v62 = vpack.c.bf16 %v497_v59, %v497_v59 }
  0x98   :  { %v415_v63 = vpop.f32.mrf.mxu2  ;;  %v540_v0 = vpack.c.bf16 %v483_v60, %v483_v60  ;;  %643 = vst.msk [vmem:[%s1284_s3 + $0xb8] sm:$0xf] %vm596_vm3, %v585_v61 }
  0x99   :  { %612 = vst.msk [vmem:[%s1284_s3 + $0x3c] sm:$0xf] %vm596_vm3, %v554_v62  ;;  %v416_v1 = vadd.f32 %v995_v39, %v415_v63  ;;  %v455_v2 = vpop.f32.mrf.mxu3 }
  0x9a   :  { %v378_v3 = vpop.f32.mrf.mxu1  ;;  %598 = vst.msk [vmem:[%s1284_s3 + $0x4] sm:$0xf] %vm596_vm3, %v540_v0  ;;  %v456_v4 = vadd.f32 %v995_v39, %v455_v2 }
  0x9b   :  { %v513_v5 = vmax.f32 %v416_v1, 0.0  ;;  %v379_v6 = vadd.f32 %v995_v39, %v378_v3  ;;  %v343_v7 = vpop.f32.mrf.mxu0 }
  0x9c   :  { %v344_v8 = vadd.f32 %v995_v39, %v343_v7  ;;  %v529_v9 = vmax.f32 %v456_v4, 0.0 }
  0x9d   :  { %v570_v10 = vpack.c.bf16 %v513_v5, %v513_v5  ;;  %v498_v11 = vmax.f32 %v379_v6, 0.0 }
  0x9e   :  { %v484_v12 = vmax.f32 %v344_v8, 0.0  ;;  %v586_v13 = vpack.c.bf16 %v529_v9, %v529_v9 }
  0x9f   :  { %628 = vst.msk [vmem:[%s1284_s3 + $0x7c] sm:$0xf] %vm596_vm3, %v570_v10  ;;  %v555_v14 = vpack.c.bf16 %v498_v11, %v498_v11 }
  0xa0   :  { %v418_v15 = vpop.f32.mrf.mxu2  ;;  %v541_v16 = vpack.c.bf16 %v484_v12, %v484_v12  ;;  %644 = vst.msk [vmem:[%s1284_s3 + $0xbc] sm:$0xf] %vm596_vm3, %v586_v13 }
  0xa1   :  { %613 = vst.msk [vmem:[%s1284_s3 + $0x40] sm:$0xf] %vm596_vm3, %v555_v14  ;;  %v419_v17 = vadd.f32 %v995_v39, %v418_v15  ;;  %v458_v18 = vpop.f32.mrf.mxu3 }
  0xa2   :  { %v380_v19 = vpop.f32.mrf.mxu1  ;;  %599 = vst.msk [vmem:[%s1284_s3 + $0x8] sm:$0xf] %vm596_vm3, %v541_v16  ;;  %v459_v20 = vadd.f32 %v995_v39, %v458_v18 }
  0xa3   :  { %v514_v21 = vmax.f32 %v419_v17, 0.0  ;;  %v381_v22 = vadd.f32 %v995_v39, %v380_v19  ;;  %v345_v23 = vpop.f32.mrf.mxu0 }
  0xa4   :  { %v346_v24 = vadd.f32 %v995_v39, %v345_v23  ;;  %v530_v25 = vmax.f32 %v459_v20, 0.0 }
  0xa5   :  { %v571_v26 = vpack.c.bf16 %v514_v21, %v514_v21  ;;  %v499_v27 = vmax.f32 %v381_v22, 0.0 }
  0xa6   :  { %v485_v28 = vmax.f32 %v346_v24, 0.0  ;;  %v587_v29 = vpack.c.bf16 %v530_v25, %v530_v25 }
  0xa7   :  { %629 = vst.msk [vmem:[%s1284_s3 + $0x80] sm:$0xf] %vm596_vm3, %v571_v26  ;;  %v556_v30 = vpack.c.bf16 %v499_v27, %v499_v27 }
  0xa8   :  { %v420_v31 = vpop.f32.mrf.mxu2  ;;  %v542_v32 = vpack.c.bf16 %v485_v28, %v485_v28  ;;  %645 = vst.msk [vmem:[%s1284_s3 + $0xc0] sm:$0xf] %vm596_vm3, %v587_v29 }
  0xa9   :  { %614 = vst.msk [vmem:[%s1284_s3 + $0x44] sm:$0xf] %vm596_vm3, %v556_v30  ;;  %v421_v33 = vadd.f32 %v995_v39, %v420_v31  ;;  %v460_v34 = vpop.f32.mrf.mxu3 }
  0xaa   :  { %v383_v35 = vpop.f32.mrf.mxu1  ;;  %600 = vst.msk [vmem:[%s1284_s3 + $0xc] sm:$0xf] %vm596_vm3, %v542_v32  ;;  %v461_v36 = vadd.f32 %v995_v39, %v460_v34 }
  0xab   :  { %v515_v37 = vmax.f32 %v421_v33, 0.0  ;;  %v384_v38 = vadd.f32 %v995_v39, %v383_v35  ;;  %v348_v40 = vpop.f32.mrf.mxu0 }
  0xac   :  { %v349_v41 = vadd.f32 %v995_v39, %v348_v40  ;;  %v531_v42 = vmax.f32 %v461_v36, 0.0 }
  0xad   :  { %v572_v43 = vpack.c.bf16 %v515_v37, %v515_v37  ;;  %v500_v44 = vmax.f32 %v384_v38, 0.0 }
  0xae   :  { %v486_v45 = vmax.f32 %v349_v41, 0.0  ;;  %v588_v46 = vpack.c.bf16 %v531_v42, %v531_v42 }
  0xaf   :  { %630 = vst.msk [vmem:[%s1284_s3 + $0x84] sm:$0xf] %vm596_vm3, %v572_v43  ;;  %v557_v47 = vpack.c.bf16 %v500_v44, %v500_v44 }
  0xb0   :  { %v423_v48 = vpop.f32.mrf.mxu2  ;;  %v543_v49 = vpack.c.bf16 %v486_v45, %v486_v45  ;;  %646 = vst.msk [vmem:[%s1284_s3 + $0xc4] sm:$0xf] %vm596_vm3, %v588_v46 }
  0xb1   :  { %615 = vst.msk [vmem:[%s1284_s3 + $0x48] sm:$0xf] %vm596_vm3, %v557_v47  ;;  %v424_v50 = vadd.f32 %v995_v39, %v423_v48  ;;  %v463_v51 = vpop.f32.mrf.mxu3 }
  0xb2   :  { %v385_v52 = vpop.f32.mrf.mxu1  ;;  %601 = vst.msk [vmem:[%s1284_s3 + $0x10] sm:$0xf] %vm596_vm3, %v543_v49  ;;  %v464_v53 = vadd.f32 %v995_v39, %v463_v51 }
  0xb3   :  { %v516_v54 = vmax.f32 %v424_v50, 0.0  ;;  %v386_v55 = vadd.f32 %v995_v39, %v385_v52  ;;  %v350_v56 = vpop.f32.mrf.mxu0 }
  0xb4   :  { %v351_v57 = vadd.f32 %v995_v39, %v350_v56  ;;  %v532_v58 = vmax.f32 %v464_v53, 0.0 }
  0xb5   :  { %v573_v59 = vpack.c.bf16 %v516_v54, %v516_v54  ;;  %v501_v60 = vmax.f32 %v386_v55, 0.0 }
  0xb6   :  { %v487_v61 = vmax.f32 %v351_v57, 0.0  ;;  %v589_v62 = vpack.c.bf16 %v532_v58, %v532_v58 }
  0xb7   :  { %631 = vst.msk [vmem:[%s1284_s3 + $0x88] sm:$0xf] %vm596_vm3, %v573_v59  ;;  %v558_v63 = vpack.c.bf16 %v501_v60, %v501_v60 }
  0xb8   :  { %v425_v0 = vpop.f32.mrf.mxu2  ;;  %v544_v1 = vpack.c.bf16 %v487_v61, %v487_v61  ;;  %647 = vst.msk [vmem:[%s1284_s3 + $0xc8] sm:$0xf] %vm596_vm3, %v589_v62 }
  0xb9   :  { %616 = vst.msk [vmem:[%s1284_s3 + $0x4c] sm:$0xf] %vm596_vm3, %v558_v63  ;;  %v426_v2 = vadd.f32 %v995_v39, %v425_v0  ;;  %v465_v3 = vpop.f32.mrf.mxu3 }
  0xba   :  { %v388_v4 = vpop.f32.mrf.mxu1  ;;  %602 = vst.msk [vmem:[%s1284_s3 + $0x14] sm:$0xf] %vm596_vm3, %v544_v1  ;;  %v466_v5 = vadd.f32 %v995_v39, %v465_v3 }
  0xbb   :  { %v517_v6 = vmax.f32 %v426_v2, 0.0  ;;  %v389_v7 = vadd.f32 %v995_v39, %v388_v4  ;;  %v353_v8 = vpop.f32.mrf.mxu0 }
  0xbc   :  { %v354_v9 = vadd.f32 %v995_v39, %v353_v8  ;;  %v533_v10 = vmax.f32 %v466_v5, 0.0 }
  0xbd   :  { %v574_v11 = vpack.c.bf16 %v517_v6, %v517_v6  ;;  %v502_v12 = vmax.f32 %v389_v7, 0.0 }
  0xbe   :  { %v488_v13 = vmax.f32 %v354_v9, 0.0  ;;  %v590_v14 = vpack.c.bf16 %v533_v10, %v533_v10 }
  0xbf   :  { %632 = vst.msk [vmem:[%s1284_s3 + $0x8c] sm:$0xf] %vm596_vm3, %v574_v11  ;;  %v559_v15 = vpack.c.bf16 %v502_v12, %v502_v12 }
  0xc0   :  { %v428_v16 = vpop.f32.mrf.mxu2  ;;  %v545_v17 = vpack.c.bf16 %v488_v13, %v488_v13  ;;  %648 = vst.msk [vmem:[%s1284_s3 + $0xcc] sm:$0xf] %vm596_vm3, %v590_v14 }
  0xc1   :  { %617 = vst.msk [vmem:[%s1284_s3 + $0x50] sm:$0xf] %vm596_vm3, %v559_v15  ;;  %v429_v18 = vadd.f32 %v995_v39, %v428_v16  ;;  %v468_v19 = vpop.f32.mrf.mxu3 }
  0xc2   :  { %v390_v20 = vpop.f32.mrf.mxu1  ;;  %603 = vst.msk [vmem:[%s1284_s3 + $0x18] sm:$0xf] %vm596_vm3, %v545_v17  ;;  %v469_v21 = vadd.f32 %v995_v39, %v468_v19 }
  0xc3   :  { %v518_v22 = vmax.f32 %v429_v18, 0.0  ;;  %v391_v23 = vadd.f32 %v995_v39, %v390_v20  ;;  %v355_v24 = vpop.f32.mrf.mxu0 }
  0xc4   :  { %v356_v25 = vadd.f32 %v995_v39, %v355_v24  ;;  %v534_v26 = vmax.f32 %v469_v21, 0.0 }
  0xc5   :  { %v575_v27 = vpack.c.bf16 %v518_v22, %v518_v22  ;;  %v503_v28 = vmax.f32 %v391_v23, 0.0 }
  0xc6   :  { %v489_v29 = vmax.f32 %v356_v25, 0.0  ;;  %v591_v30 = vpack.c.bf16 %v534_v26, %v534_v26 }
  0xc7   :  { %633 = vst.msk [vmem:[%s1284_s3 + $0x90] sm:$0xf] %vm596_vm3, %v575_v27  ;;  %v560_v31 = vpack.c.bf16 %v503_v28, %v503_v28 }
  0xc8   :  { %v430_v32 = vpop.f32.mrf.mxu2  ;;  %v546_v33 = vpack.c.bf16 %v489_v29, %v489_v29  ;;  %649 = vst.msk [vmem:[%s1284_s3 + $0xd0] sm:$0xf] %vm596_vm3, %v591_v30 }
  0xc9   :  { %618 = vst.msk [vmem:[%s1284_s3 + $0x54] sm:$0xf] %vm596_vm3, %v560_v31  ;;  %v431_v34 = vadd.f32 %v995_v39, %v430_v32  ;;  %v470_v35 = vpop.f32.mrf.mxu3 }
  0xca   :  { %v393_v36 = vpop.f32.mrf.mxu1  ;;  %604 = vst.msk [vmem:[%s1284_s3 + $0x1c] sm:$0xf] %vm596_vm3, %v546_v33  ;;  %v471_v37 = vadd.f32 %v995_v39, %v470_v35 }
  0xcb   :  { %v519_v38 = vmax.f32 %v431_v34, 0.0  ;;  %v394_v40 = vadd.f32 %v995_v39, %v393_v36  ;;  %v358_v41 = vpop.f32.mrf.mxu0 }
  0xcc   :  { %v359_v42 = vadd.f32 %v995_v39, %v358_v41  ;;  %v535_v43 = vmax.f32 %v471_v37, 0.0 }
  0xcd   :  { %v576_v44 = vpack.c.bf16 %v519_v38, %v519_v38  ;;  %v504_v45 = vmax.f32 %v394_v40, 0.0 }
  0xce   :  { %v490_v46 = vmax.f32 %v359_v42, 0.0  ;;  %v592_v47 = vpack.c.bf16 %v535_v43, %v535_v43 }
  0xcf   :  { %634 = vst.msk [vmem:[%s1284_s3 + $0x94] sm:$0xf] %vm596_vm3, %v576_v44  ;;  %v561_v48 = vpack.c.bf16 %v504_v45, %v504_v45 }
  0xd0   :  { %v433_v49 = vpop.f32.mrf.mxu2  ;;  %v547_v50 = vpack.c.bf16 %v490_v46, %v490_v46  ;;  %650 = vst.msk [vmem:[%s1284_s3 + $0xd4] sm:$0xf] %vm596_vm3, %v592_v47 }
  0xd1   :  { %619 = vst.msk [vmem:[%s1284_s3 + $0x58] sm:$0xf] %vm596_vm3, %v561_v48  ;;  %v434_v51 = vadd.f32 %v995_v39, %v433_v49  ;;  %v473_v52 = vpop.f32.mrf.mxu3 }
  0xd2   :  { %v395_v53 = vpop.f32.mrf.mxu1  ;;  %605 = vst.msk [vmem:[%s1284_s3 + $0x20] sm:$0xf] %vm596_vm3, %v547_v50  ;;  %v474_v54 = vadd.f32 %v995_v39, %v473_v52 }
  0xd3   :  { %v520_v55 = vmax.f32 %v434_v51, 0.0  ;;  %v396_v56 = vadd.f32 %v995_v39, %v395_v53  ;;  %v360_v57 = vpop.f32.mrf.mxu0 }
  0xd4   :  { %v361_v58 = vadd.f32 %v995_v39, %v360_v57  ;;  %v536_v59 = vmax.f32 %v474_v54, 0.0 }
  0xd5   :  { %v577_v60 = vpack.c.bf16 %v520_v55, %v520_v55  ;;  %v505_v61 = vmax.f32 %v396_v56, 0.0 }
  0xd6   :  { %v491_v62 = vmax.f32 %v361_v58, 0.0  ;;  %v593_v63 = vpack.c.bf16 %v536_v59, %v536_v59 }
  0xd7   :  { %635 = vst.msk [vmem:[%s1284_s3 + $0x98] sm:$0xf] %vm596_vm3, %v577_v60  ;;  %v562_v0 = vpack.c.bf16 %v505_v61, %v505_v61 }
  0xd8   :  { %v435_v1 = vpop.f32.mrf.mxu2  ;;  %v548_v2 = vpack.c.bf16 %v491_v62, %v491_v62  ;;  %651 = vst.msk [vmem:[%s1284_s3 + $0xd8] sm:$0xf] %vm596_vm3, %v593_v63 }
  0xd9   :  { %620 = vst.msk [vmem:[%s1284_s3 + $0x5c] sm:$0xf] %vm596_vm3, %v562_v0  ;;  %v436_v3 = vadd.f32 %v995_v39, %v435_v1  ;;  %v475_v4 = vpop.f32.mrf.mxu3 }
  0xda   :  { %v398_v5 = vpop.f32.mrf.mxu1  ;;  %606 = vst.msk [vmem:[%s1284_s3 + $0x24] sm:$0xf] %vm596_vm3, %v548_v2  ;;  %v476_v6 = vadd.f32 %v995_v39, %v475_v4 }
  0xdb   :  { %v521_v7 = vmax.f32 %v436_v3, 0.0  ;;  %v399_v8 = vadd.f32 %v995_v39, %v398_v5  ;;  %v363_v9 = vpop.f32.mrf.mxu0 }
  0xdc   :  { %v364_v10 = vadd.f32 %v995_v39, %v363_v9  ;;  %v537_v11 = vmax.f32 %v476_v6, 0.0 }
  0xdd   :  { %v578_v12 = vpack.c.bf16 %v521_v7, %v521_v7  ;;  %v506_v13 = vmax.f32 %v399_v8, 0.0 }
  0xde   :  { %v492_v14 = vmax.f32 %v364_v10, 0.0  ;;  %v594_v15 = vpack.c.bf16 %v537_v11, %v537_v11 }
  0xdf   :  { %636 = vst.msk [vmem:[%s1284_s3 + $0x9c] sm:$0xf] %vm596_vm3, %v578_v12  ;;  %v563_v16 = vpack.c.bf16 %v506_v13, %v506_v13 }
  0xe0   :  { %v438_v17 = vpop.f32.mrf.mxu2  ;;  %v549_v18 = vpack.c.bf16 %v492_v14, %v492_v14  ;;  %652 = vst.msk [vmem:[%s1284_s3 + $0xdc] sm:$0xf] %vm596_vm3, %v594_v15 }
  0xe1   :  { %621 = vst.msk [vmem:[%s1284_s3 + $0x60] sm:$0xf] %vm596_vm3, %v563_v16  ;;  %v439_v19 = vadd.f32 %v995_v39, %v438_v17  ;;  %v478_v20 = vpop.f32.mrf.mxu3 }
  0xe2   :  { %v400_v21 = vpop.f32.mrf.mxu1  ;;  %607 = vst.msk [vmem:[%s1284_s3 + $0x28] sm:$0xf] %vm596_vm3, %v549_v18  ;;  %v479_v22 = vadd.f32 %v995_v39, %v478_v20 }
  0xe3   :  { %v522_v23 = vmax.f32 %v439_v19, 0.0  ;;  %v401_v24 = vadd.f32 %v995_v39, %v400_v21  ;;  %v365_v25 = vpop.f32.mrf.mxu0 }
  0xe4   :  { %v366_v26 = vadd.f32 %v995_v39, %v365_v25  ;;  %v538_v27 = vmax.f32 %v479_v22, 0.0 }
  0xe5   :  { %v579_v28 = vpack.c.bf16 %v522_v23, %v522_v23  ;;  %v507_v29 = vmax.f32 %v401_v24, 0.0 }
  0xe6   :  { %v493_v30 = vmax.f32 %v366_v26, 0.0  ;;  %v595_v31 = vpack.c.bf16 %v538_v27, %v538_v27 }
  0xe7   :  { %637 = vst.msk [vmem:[%s1284_s3 + $0xa0] sm:$0xf] %vm596_vm3, %v579_v28  ;;  %v564_v32 = vpack.c.bf16 %v507_v29, %v507_v29 }
  0xe8   :  { %v440_v33 = vpop.f32.mrf.mxu2  ;;  %v550_v34 = vpack.c.bf16 %v493_v30, %v493_v30  ;;  %654 = vst.msk [vmem:[%s1284_s3 + $0xe0] sm:$0x1] %vm653_vm4, %v595_v31 }
  0xe9   :  { %622 = vst.msk [vmem:[%s1284_s3 + $0x64] sm:$0xf] %vm596_vm3, %v564_v32  ;;  %v441_v35 = vadd.f32 %v995_v39, %v440_v33  ;;  %v480_v36 = vpop.f32.mrf.mxu3 }
  0xea   :  { %v403_v37 = vpop.f32.mrf.mxu1  ;;  %608 = vst.msk [vmem:[%s1284_s3 + $0x2c] sm:$0xf] %vm596_vm3, %v550_v34 }
  0xeb   :  { %v523_v38 = vmax.f32 %v441_v35, 0.0  ;;  %v404_v40 = vadd.f32 %v995_v39, %v403_v37  ;;  %v368_v41 = vpop.f32.mrf.mxu0 }
  0xec   :  { %v369_v42 = vadd.f32 %v995_v39, %v368_v41 }
  0xed   :  { %v580_v43 = vpack.c.bf16 %v523_v38, %v523_v38  ;;  %v508_v44 = vmax.f32 %v404_v40, 0.0 }
  0xee   :  { %v494_v45 = vmax.f32 %v369_v42, 0.0 }
  0xef   :  { %638 = vst.msk [vmem:[%s1284_s3 + $0xa4] sm:$0xf] %vm596_vm3, %v580_v43  ;;  %v565_v46 = vpack.c.bf16 %v508_v44, %v508_v44 }
  0xf0   :  { %v443_v47 = vpop.f32.mrf.mxu2  ;;  %v551_v48 = vpack.c.bf16 %v494_v45, %v494_v45 }
  0xf1   :  { %623 = vst.msk [vmem:[%s1284_s3 + $0x68] sm:$0xf] %vm596_vm3, %v565_v46  ;;  %v444_v49 = vadd.f32 %v995_v39, %v443_v47 }
  0xf2   :  { %v405_v50 = vpop.f32.mrf.mxu1  ;;  %609 = vst.msk [vmem:[%s1284_s3 + $0x30] sm:$0xf] %vm596_vm3, %v551_v48 }
  0xf3   :  { %v524_v51 = vmax.f32 %v444_v49, 0.0  ;;  %v406_v52 = vadd.f32 %v995_v39, %v405_v50  ;;  %v370_v53 = vpop.f32.mrf.mxu0 }
  0xf4   :  { %v371_v54 = vadd.f32 %v995_v39, %v370_v53 }
  0xf5   :  { %v581_v55 = vpack.c.bf16 %v524_v51, %v524_v51  ;;  %v509_v56 = vmax.f32 %v406_v52, 0.0 }
  0xf6   :  { %v495_v57 = vmax.f32 %v371_v54, 0.0 }
  0xf7   :  { %639 = vst.msk [vmem:[%s1284_s3 + $0xa8] sm:$0xf] %vm596_vm3, %v581_v55  ;;  %v566_v58 = vpack.c.bf16 %v509_v56, %v509_v56 }
  0xf8   :  { %v445_v59 = vpop.f32.mrf.mxu2  ;;  %v552_v60 = vpack.c.bf16 %v495_v57, %v495_v57 }
  0xf9   :  { %624 = vst.msk [vmem:[%s1284_s3 + $0x6c] sm:$0xf] %vm596_vm3, %v566_v58  ;;  %v446_v61 = vadd.f32 %v995_v39, %v445_v59 }
  0xfa   :  { %v408_v62 = vpop.f32.mrf.mxu1  ;;  %610 = vst.msk [vmem:[%s1284_s3 + $0x34] sm:$0xf] %vm596_vm3, %v552_v60 }
  0xfb   :  { %v525_v63 = vmax.f32 %v446_v61, 0.0  ;;  %v409_v0 = vadd.f32 %v995_v39, %v408_v62 }
  0xfd   :  { %v582_v1 = vpack.c.bf16 %v525_v63, %v525_v63  ;;  %v510_v2 = vmax.f32 %v409_v0, 0.0 }
  0xff   :  { %640 = vst.msk [vmem:[%s1284_s3 + $0xac] sm:$0xf] %vm596_vm3, %v582_v1  ;;  %v567_v3 = vpack.c.bf16 %v510_v2, %v510_v2 }
 0x100   :  { %v448_v4 = vpop.f32.mrf.mxu2 }
 0x101   :  { %625 = vst.msk [vmem:[%s1284_s3 + $0x70] sm:$0xf] %vm596_vm3, %v567_v3  ;;  %v449_v5 = vadd.f32 %v995_v39, %v448_v4 }
 0x102   :  { %v410_v6 = vpop.f32.mrf.mxu1 }
 0x103   :  { %v526_v7 = vmax.f32 %v449_v5, 0.0  ;;  %v411_v8 = vadd.f32 %v995_v39, %v410_v6 }
 0x105   :  { %v583_v9 = vpack.c.bf16 %v526_v7, %v526_v7  ;;  %v511_v10 = vmax.f32 %v411_v8, 0.0 }
 0x107   :  { %641 = vst.msk [vmem:[%s1284_s3 + $0xb0] sm:$0xf] %vm596_vm3, %v583_v9  ;;  %v568_v11 = vpack.c.bf16 %v511_v10, %v511_v10 }
 0x108   :  { %v450_v12 = vpop.f32.mrf.mxu2 }
 0x109   :  { %626 = vst.msk [vmem:[%s1284_s3 + $0x74] sm:$0xf] %vm596_vm3, %v568_v11  ;;  %v451_v13 = vadd.f32 %v995_v39, %v450_v12 }
 0x10b   :  { %v527_v14 = vmax.f32 %v451_v13, 0.0 }
 0x10d   :  { %v584_v15 = vpack.c.bf16 %v527_v14, %v527_v14 }
 0x10f   :  { %642 = vst.msk [vmem:[%s1284_s3 + $0xb4] sm:$0xf] %vm596_vm3, %v584_v15 }

// kernel: model_forward.3
= control target key start
LH: loop header
LB: loop body
LE: loop exit
PB: predicated region body
PF: predicated region fallthrough
CT: control target
= control target key end

     0   :  { %12 = vsyncpa [#allocation3], 0  ;;  %s5037_s0 = inlined_call_operand.vmem [shape: bf16[2,49,288], index: 0, kind: input, shape index: {}]   ;;  %s5038_s1 = inlined_call_operand.vmem [shape: bf16[288,64], index: 1, kind: input, shape index: {}]   ;;  %s5039_s2 = inlined_call_operand.vmem [shape: f32[1,64], index: 2, kind: input, shape index: {}]   ;;  %s5040_s3 = inlined_call_operand.vmem [shape: bf16[64,2048], index: 3, kind: input, shape index: {}]   ;;  %s5041_s4 = inlined_call_operand.vmem [shape: f32[1,2048], index: 4, kind: input, shape index: {}]   ;;  %s5042_s5 = inlined_call_operand.vmem [shape: bf16[2048,128], index: 5, kind: input, shape index: {}]   ;;  %s5043_s6 = inlined_call_operand.vmem [shape: f32[1,128], index: 6, kind: input, shape index: {}]   ;;  %s5044_s7 = inlined_call_operand.hbm [shape: f32[2,1,128], index: 7, kind: output, shape index: {}]  }
   0x1   :  { %14 = vsyncpa [#allocation3 + $0x1], 0  ;;  %s3969_s24 = smov 0   ;;  %s3971_s25 = smov 0  }
   0x2   :  { %s3973_s26 = smov 0   ;;  %s3975_s27 = smov 0  }
   0x3   :  { %s3977_s28 = smov 0   ;;  %s3979_s29 = smov 0  }
   0x4 LB: > { %s2667_s30 = sadd.s32 4294967295, %s3927_s29   ;;  %s2668_s8 = sadd.s32 4294967294, %s3927_s29   ;;  %s3927_s29 = sphi %s3979_s29, %s20_s29   ;;  %s3923_s28 = sphi %s3977_s28, %s5051_s28   ;;  %s3919_s27 = sphi %s3975_s27, %s5050_s27   ;;  %s3915_s26 = sphi %s3973_s26, %s5049_s26   ;;  %s3911_s25 = sphi %s3971_s25, %s5048_s25   ;;  %s3907_s24 = sphi %s3969_s24, %s5047_s24  }
   0x5   : > { %s32_s9 = sadd.s32 1, %s3923_s28  ;;  %s203_s10 = sadd.s32 1, %s3915_s26 }
   0x6   : > { %p34_p0 = scmp.ge.s32.totalorder %s32_s9, 2  ;;  %p213_p1 = scmp.ne.s32.totalorder %s3915_s26, %s3911_s25 }
   0x7   : > { %p214_p2 = scmp.eq.s32.totalorder %s2667_s30, 1  ;;  %p219_p3 = scmp.ne.s32.totalorder %s3911_s25, %s3907_s24 }
   0x8   : > { %s5053_s9 = smov (%p34_p0, %s32_s9), 0  ;;  %p220_p5 = scmp.eq.s32.totalorder %s2668_s8, 1 }
   0x9   : > { %p4009_p4 = por %p214_p2, %p213_p1  ;;  %s198_s12 = ssub.s32 %s3923_s28, %s5053_s9 }
   0xa   : > { %p2673_p6 = scmp.ge.s32.totalorder %s3927_s29, 1  ;;  %p201_p7 = scmp.eq.s32.totalorder %s198_s12, 0 }
   0xb   : > { %p4016_p8 = por %p220_p5, %p219_p3  ;;  %p271_p9 = scmp.lt.s32.totalorder %s3927_s29, 3 }
   0xc   : > { %s4022_s14 = scalar_select %p201_p7, %s3915_s26, %s203_s10  }
   0xd   : > { %p272_p10 = pnand %p2673_p6, %p271_p9 }
   0xe   : > { %p309_p11 = scmp.lt.s32.totalorder (!%p272_p10), %s3919_s27, 1  ;;  %s307_s18 = sand.u32 (!%p272_p10), 1, %s3911_s25  }
   0xf   : > { %275 = sbr.rel (%p272_p10) target bundleno = 636 (0x27c), region = 48  ;;  %s2572_s20 = scalar_lea.hbm (!%p272_p10), %s5044_s7, %s3919_s27 }
  0x10   : > { %s308_s21 = scalar_lea.vmem (!%p272_p10), [#allocation2], %s307_s18  ;;  %s2576_s30 = sshll.u32 (!%p272_p10), %s2572_s20, 4  ;;  %s2577_s30 = int_to_ptr.hbm [resolvable:$true] %s2576_s30 }
  0x11   : > { %s2574_s23 = sshll.u32 (!%p272_p10), %s308_s21, 4  ;;  %s3863_s10 = sshra.s32 (!%p272_p10), %s2577_s30, 4  ;;  %s2575_s23 = int_to_ptr.vmem [resolvable:$true] %s2574_s23  ;;  %s3864_s10 = int_to_ptr.hbm [resolvable:$true] %s3863_s10 }
  0x12   : > { %s3865_s12 = scalar_lea.hbm (!%p272_p10), %s3864_s10, 1  ;;  %s3869_s16 = scalar_lea.hbm (!%p272_p10), %s5044_s7, 2 }
  0x13   : > { %p3866_p12 = scmp.ne.s32.totalorder (!%p272_p10), %s3864_s10, %s3865_s12  ;;  %p3870_p1 = scmp.lt.s32.totalorder (!%p272_p10), %s3864_s10, %s5044_s7 }
  0x14   : > { %v3589_v0 = vld [vmem:[%s5038_s1 + $0x38] sm:$0xff]  ;;  %v3588_v2 = vld [vmem:[%s5038_s1 + $0x30] sm:$0xff]  ;;  %v3599_v4 = vld [vmem:[%s5038_s1 + $0x88] sm:$0xff]  ;;  %s310_s8 = scalar_select %p309_p11, %s3919_s27, 1  ;;  %vm539_vm0 = vcmask 261120   ;;  %vm643_vm1 = vcmask 523264  }
  0x15   : > { %v3597_v1 = vld [vmem:[%s5038_s1 + $0x78] sm:$0xff]  ;;  %552 = vmatpush.bf16.msra.mxu0 %v3589_v0  ;;  %v3596_v3 = vld [vmem:[%s5038_s1 + $0x70] sm:$0xff]  ;;  %614 = vmatpush.bf16.msra.mxu2 %v3599_v4  ;;  %v3598_v5 = vld [vmem:[%s5038_s1 + $0x80] sm:$0xff]  ;;  %vm655_vm2 = vcmask 516096   ;;  %p3867_p13 = pnand %p3866_p12, %p4009_p4  ;;  %p3871_p2 = scmp.lt.s32.totalorder %s3869_s16, %s3865_s12 }
  0x16   : > { %580 = vmatpush.bf16.msra.mxu1 %v3597_v1  ;;  %s3792_s15 = smul.u32 84, %s310_s8  ;;  %v3587_v6 = vld [vmem:[%s5038_s1 + $0x28] sm:$0xff]  ;;  %v3586_v11 = vld [vmem:[%s5038_s1 + $0x20] sm:$0xff]  ;;  %v3585_v13 = vld [vmem:[%s5038_s1 + $0x18] sm:$0xff]  ;;  %s2563_s8 = scalar_lea.sflag [#allocation3], %s307_s18 }
  0x17   : > { %v3595_v7 = vld [vmem:[%s5038_s1 + $0x68] sm:$0xff]  ;;  %v3594_v12 = vld [vmem:[%s5038_s1 + $0x60] sm:$0xff]  ;;  %v3593_v14 = vld [vmem:[%s5038_s1 + $0x58] sm:$0xff]  ;;  %p3868_p0 = pneg %p3867_p13  ;;  %p3872_p3 = por %p3871_p2, %p3870_p1 }
  0x18   : > { %s4053_s22 = scalar_lea.vmem %s5037_s0, %s3792_s15  ;;  %v3584_v15 = vld [vmem:[%s5038_s1 + $0x10] sm:$0xff]  ;;  %v3583_v19 = vld [vmem:[%s5038_s1 + $0x8] sm:$0xff]  ;;  %v3582_v22 = vld [vmem:[%s5038_s1] sm:$0xff] }
  0x19   : > { %553 = vmatpush.bf16.msra.mxu0 %v3588_v2  ;;  %v2685_v8 = vld [vmem:[%s4053_s22 + $0x8] sm:$0xf]  ;;  %v3575_v9 = vld [vmem:[%s4053_s22 + $0x10] sm:$0xf0]  ;;  %615 = vmatpush.bf16.msra.mxu2 %v3598_v5  ;;  %v2697_v17 = vld [vmem:[%s4053_s22 + $0x20] sm:$0xf]  ;;  %p3873_p5 = pnand %p3872_p3, %p3868_p0 }
  0x1a   : > { %581 = vmatpush.bf16.msra.mxu1 %v3596_v3  ;;  %v2686_v10 = vor.u32 %v3575_v9, %v2685_v8  ;;  %v3592_v16 = vld [vmem:[%s5038_s1 + $0x50] sm:$0xff]  ;;  %v3578_v18 = vld [vmem:[%s4053_s22 + $0x28] sm:$0xf0]  ;;  %v3590_v23 = vld [vmem:[%s5038_s1 + $0x40] sm:$0xff] }
  0x1b   : > { %v3591_v20 = vld [vmem:[%s5038_s1 + $0x48] sm:$0xff]  ;;  %v2698_v21 = vor.u32 %v3578_v18, %v2697_v17  ;;  %v2677_v24 = vld [vmem:[%s4053_s22] sm:$0xf]  ;;  %v3573_v26 = vld [vmem:[%s4053_s22 + $0x4] sm:$0xf] }
  0x1c   : > { %2783 = vmatmul.msk.bf16.vlgmr.msra.gmra.mxu2 %vm539_vm0, %v2686_v10  ;;  %v3574_v25 = vld [vmem:[%s4053_s22 + $0x8] sm:$0xf0]  ;;  %v2679_v27 = vld [vmem:[%s4053_s22 + $0xc] sm:$0xf0]  ;;  %v2709_v30 = vld [vmem:[%s4053_s22 + $0x38] sm:$0xf] }
  0x1d   : > { %554 = vmatpush.bf16.msra.mxu0 %v3587_v6  ;;  %v2678_v28 = vor.u32 %v3574_v25, %v2677_v24  ;;  %v2682_v29 = vor.u32 %v3573_v26, %v2679_v27  ;;  %v3581_v31 = vld [vmem:[%s4053_s22 + $0x40] sm:$0xf0]  ;;  %v2689_v33 = vld [vmem:[%s4053_s22 + $0x18] sm:$0xf]  ;;  %v3576_v35 = vld [vmem:[%s4053_s22 + $0x1c] sm:$0xf] }
  0x1e   : > { %582 = vmatpush.bf16.msra.mxu1 %v3595_v7  ;;  %v2710_v32 = vor.u32 %v3581_v31, %v2709_v30  ;;  %v3577_v34 = vld [vmem:[%s4053_s22 + $0x20] sm:$0xf0]  ;;  %v2691_v36 = vld [vmem:[%s4053_s22 + $0x24] sm:$0xf0]  ;;  %v335_v39 = vld [vmem:[%s4053_s22 + $0x50] sm:$0x1] }
  0x1f   : > { %v2690_v37 = vor.u32 %v3577_v34, %v2689_v33  ;;  %v2694_v38 = vor.u32 %v3576_v35, %v2691_v36  ;;  %v410_v40 = vunpack.c.l.b16 %v335_v39  ;;  %v2701_v42 = vld [vmem:[%s4053_s22 + $0x30] sm:$0xf]  ;;  %v3580_v43 = vld [vmem:[%s4053_s22 + $0x38] sm:$0xf0]  ;;  %v3579_v44 = vld [vmem:[%s4053_s22 + $0x34] sm:$0xf] }
  0x20   : > { %v2703_v45 = vld [vmem:[%s4053_s22 + $0x3c] sm:$0xf0]  ;;  %v2702_v46 = vor.u32 %v3580_v43, %v2701_v42  ;;  %v334_v48 = vld [vmem:[%s4053_s22 + $0x48] sm:$0x11]  ;;  %v2997_v7 = vld [vmem:[%s5040_s3 + $0x190] sm:$0xf] }
  0x21   : > { %555 = vmatpush.bf16.msra.mxu0 %v3586_v11  ;;  %v422_v41 = vpack.c.b16 %v410_v40, %v410_v40  ;;  %v2706_v47 = vor.u32 %v3579_v44, %v2703_v45  ;;  %v408_v49 = vunpack.c.l.b16 %v334_v48  ;;  %v409_v50 = vunpack.c.h.b16 %v334_v48  ;;  %v4116_v63 = vld [vmem:[%s5039_s2] ss:$0 sm:$0xff]  ;;  %v3658_v11 = vld [vmem:[%s5040_s3 + $0x1cc] sm:$0xf0]  ;;  %v3619_v48 = vld [vmem:[%s5040_s3 + $0x9c] sm:$0xf] }
  0x22   : > { %583 = vmatpush.bf16.msra.mxu1 %v3594_v12  ;;  %v2981_v5 = vld [vmem:[%s5040_s3 + $0x180] sm:$0xf]  ;;  %v3651_v12 = vld [vmem:[%s5040_s3 + $0x19c] sm:$0xf]  ;;  %v3642_v27 = vld [vmem:[%s5040_s3 + $0x14c] sm:$0xf0] }
  0x23   : > { %v420_v51 = vpack.c.b16 %v408_v49, %v408_v49  ;;  %v421_v52 = vpack.c.b16 %v409_v50, %v409_v50  ;;  %v3656_v6 = vld [vmem:[%s5040_s3 + $0x1bc] sm:$0xf0]  ;;  %v2879_v50 = vld [vmem:[%s5040_s3 + $0xd8] sm:$0xf0] }
  0x24   : > { %v2982_v10 = vor.u32 %v3656_v6, %v2981_v5  ;;  %v3644_v33 = vld [vmem:[%s5040_s3 + $0x15c] sm:$0xf0]  ;;  %v2815_v5 = vld [vmem:[%s5040_s3 + $0x58] sm:$0xf0] }
  0x25   : > { %556 = vmatpush.bf16.msra.mxu0 %v3585_v13  ;;  %v2998_v13 = vor.u32 %v3658_v11, %v2997_v7  ;;  %v2853_v39 = vld [vmem:[%s5040_s3 + $0x80] sm:$0xf] }
  0x26   : > { %584 = vmatpush.bf16.msra.mxu1 %v3593_v14  ;;  %v3007_v14 = vld [vmem:[%s5040_s3 + $0x1d8] sm:$0xf0]  ;;  %1092 = vmatpush.bf16.msra.mxu3 %v2982_v10  ;;  %v3624_v40 = vld [vmem:[%s5040_s3 + $0xbc] sm:$0xf0] }
  0x27   : > { %v3010_v18 = vor.u32 %v3651_v12, %v3007_v14  ;;  %1144 = vmatpush.bf16.msrb.mxu2 %v2998_v13  ;;  %v3612_v7 = vld [vmem:[%s5040_s3 + $0x5c] sm:$0xf0] }
  0x29   : > { %557 = vmatpush.bf16.msra.mxu0 %v3584_v15  ;;  %v3013_v15 = vld [vmem:[%s5040_s3 + $0x1a0] sm:$0xf] }
  0x2a   : > { %585 = vmatpush.bf16.msra.mxu1 %v3592_v16  ;;  %v3660_v16 = vld [vmem:[%s5040_s3 + $0x1dc] sm:$0xf0] }
  0x2c   : > { %2784 = vmatmul.msk.bf16.gmra.mxu2 %vm539_vm0, %v2698_v21  ;;  %v2917_v21 = vld [vmem:[%s5040_s3 + $0x100] sm:$0xf] }
  0x2d   : > { %558 = vmatpush.bf16.msra.mxu0 %v3583_v19  ;;  %v3014_v19 = vor.u32 %v3660_v16, %v3013_v15 }
  0x2e   : > { %586 = vmatpush.bf16.msra.mxu1 %v3591_v20 }
  0x31   : > { %559 = vmatpush.bf16.msra.mxu0 %v3582_v22  ;;  %v3640_v22 = vld [vmem:[%s5040_s3 + $0x13c] sm:$0xf0] }
  0x32   : > { %587 = vmatpush.bf16.msra.mxu1 %v3590_v23  ;;  %v2933_v23 = vld [vmem:[%s5040_s3 + $0x110] sm:$0xf]  ;;  %v2918_v26 = vor.u32 %v3640_v22, %v2917_v21  ;;  %v3005_v22 = vld [vmem:[%s5040_s3 + $0x198] sm:$0xf] }
  0x33   : > { %v2934_v30 = vor.u32 %v3642_v27, %v2933_v23  ;;  %v3659_v23 = vld [vmem:[%s5040_s3 + $0x1d4] sm:$0xf0]  ;;  %v3023_v27 = vld [vmem:[%s5040_s3 + $0x1e8] sm:$0xf0] }
  0x34   : > { %560 = vmatmul.bf16.vlgmr.msra.gmra.mxu0 %v2678_v28  ;;  %v3635_v28 = vld [vmem:[%s5040_s3 + $0x11c] sm:$0xf]  ;;  %1093 = vmatpush.bf16.msra.mxu3 %v2918_v26  ;;  %v3006_v26 = vor.u32 %v3659_v23, %v3005_v22 }
  0x35   : > { %588 = vmatmul.bf16.vlgmr.msra.gmra.mxu1 %v2682_v29  ;;  %1183 = vmatpush.bf16.msrb.mxu0 %v3010_v18  ;;  %v2943_v29 = vld [vmem:[%s5040_s3 + $0x158] sm:$0xf0] }
  0x36   : > { %1196 = vmatpush.bf16.msrb.mxu1 %v3014_v19  ;;  %v2946_v31 = vor.u32 %v3635_v28, %v2943_v29  ;;  %1145 = vmatpush.bf16.msrb.mxu2 %v2934_v30  ;;  %v3648_v19 = vld [vmem:[%s5040_s3 + $0x184] sm:$0xf]  ;;  %v3029_v28 = vld [vmem:[%s5040_s3 + $0x1b0] sm:$0xf] }
  0x37   : > { %v3662_v29 = vld [vmem:[%s5040_s3 + $0x1ec] sm:$0xf0] }
  0x39   : > { %1184 = vmatpush.bf16.msrb.mxu0 %v2946_v31  ;;  %v3030_v31 = vor.u32 %v3662_v29, %v3029_v28 }
  0x3c   : > { %2785 = vmatmul.msk.bf16.gmra.mxu2 %vm539_vm0, %v2710_v32  ;;  %v2949_v32 = vld [vmem:[%s5040_s3 + $0x120] sm:$0xf] }
  0x3d   : > { %v2950_v35 = vor.u32 %v3644_v33, %v2949_v32  ;;  %v3632_v32 = vld [vmem:[%s5040_s3 + $0x104] sm:$0xf] }
  0x3e   : > { %v2919_v33 = vld [vmem:[%s5040_s3 + $0x140] sm:$0xf0] }
  0x3f   : > { %1197 = vmatpush.bf16.msrb.mxu1 %v2950_v35 }
  0x44   : > { %565 = vmatmul.bf16.gmra.mxu0 %v2690_v37 }
  0x45   : > { %593 = vmatmul.bf16.gmra.mxu1 %v2694_v38 }
  0x4c   : > { %2786 = vmatmul.msk.bf16.gmra.mxu2 %vm539_vm0, %v422_v41  ;;  %v2869_v41 = vld [vmem:[%s5040_s3 + $0x90] sm:$0xf] }
  0x54   : > { %570 = vmatmul.bf16.gmra.mxu0 %v2702_v46  ;;  %v2854_v46 = vor.u32 %v3624_v40, %v2853_v39  ;;  %v2959_v39 = vld [vmem:[%s5040_s3 + $0x168] sm:$0xf0] }
  0x55   : > { %598 = vmatmul.bf16.gmra.mxu1 %v2706_v47  ;;  %v3626_v47 = vld [vmem:[%s5040_s3 + $0xcc] sm:$0xf0] }
  0x56   : > { %v2870_v49 = vor.u32 %v3626_v47, %v2869_v41  ;;  %1094 = vmatpush.bf16.msra.mxu3 %v2854_v46 }
  0x58   : > { %1146 = vmatpush.bf16.msrb.mxu2 %v2870_v49  ;;  %v2877_v49 = vld [vmem:[%s5040_s3 + $0x98] sm:$0xf] }
  0x64   : > { %575 = vmatmul.bf16.gmra.mxu0 %v420_v51  ;;  %v2885_v51 = vld [vmem:[%s5040_s3 + $0xa0] sm:$0xf] }
  0x65   : > { %603 = vmatmul.bf16.gmra.mxu1 %v421_v52  ;;  %v3628_v52 = vld [vmem:[%s5040_s3 + $0xdc] sm:$0xf0] }
  0x9f   : > { %v617_v53 = vpop.f32.mrf.mxu2 }
  0xa7   : > { %v619_v54 = vpop.f32.mrf.mxu2 }
  0xaf   : > { %v4109_v57 = vpop.f32.mrf.mxu2 }
  0xb1   : > { %v561_v55 = vpop.f32.mrf.mxu0 }
  0xb2   : > { %v589_v56 = vpop.f32.mrf.mxu1  ;;  %v562_v1 = vadd.f32 %v4116_v63, %v561_v55  ;;  %v2882_v55 = vor.u32 %v3619_v48, %v2879_v50  ;;  %v2855_v48 = vld [vmem:[%s5040_s3 + $0xc0] sm:$0xf0] }
  0xb4   : > { %v590_v8 = vadd.f32 %v589_v56, %v562_v1  ;;  %v2886_v56 = vor.u32 %v3628_v52, %v2885_v51  ;;  %1185 = vmatpush.bf16.msrb.mxu0 %v2882_v55  ;;  %v3621_v55 = vld [vmem:[%s5040_s3 + $0xac] sm:$0xf] }
  0xb6   : > { %v618_v24 = vadd.f32 %v617_v53, %v590_v8  ;;  %1198 = vmatpush.bf16.msrb.mxu1 %v2886_v56  ;;  %v2895_v56 = vld [vmem:[%s5040_s3 + $0xe8] sm:$0xf0] }
  0xb7   : > { %v4111_v60 = vpop.f32.mrf.mxu2 }
  0xb8   : > { %v636_v42 = vmax.f32 %v618_v24, 0.0  ;;  %v3653_v24 = vld [vmem:[%s5040_s3 + $0x1ac] sm:$0xf] }
  0xb9   : > { %v563_v58 = vpop.f32.mrf.mxu0  ;;  %v3026_v30 = vor.u32 %v3653_v24, %v3023_v27 }
  0xba   : > { %v591_v59 = vpop.f32.mrf.mxu1  ;;  %v564_v2 = vadd.f32 %v4116_v63, %v563_v58  ;;  %v644_v10 = vsel %vm643_vm1, %v636_v42, 0.0  ;;  %v3646_v42 = vld [vmem:[%s5040_s3 + $0x16c] sm:$0xf0] }
  0xbc   : > { %v592_v17 = vadd.f32 %v591_v59, %v564_v2  ;;  %v2789_v59 = vld [vmem:[%s5040_s3] sm:$0xf] }
  0xbe   : > { %v620_v34 = vadd.f32 %v619_v54, %v592_v17 }
  0xbf   : > { %v4118_v0 = vpop.f32.mrf.mxu2 }
  0xc0   : > { %v637_v53 = vmax.f32 %v620_v34, 0.0  ;;  %v2941_v34 = vld [vmem:[%s5040_s3 + $0x118] sm:$0xf] }
  0xc1   : > { %v566_v61 = vpop.f32.mrf.mxu0 }
  0xc2   : > { %v594_v62 = vpop.f32.mrf.mxu1  ;;  %v567_v20 = vadd.f32 %v4116_v63, %v566_v61  ;;  %v3608_v61 = vld [vmem:[%s5040_s3 + $0x3c] sm:$0xf0]  ;;  %v645_v11 = vsel %vm643_vm1, %v637_v53, 0.0 }
  0xc3   : > { %v646_v50 = vadd.f32 %v645_v11, %v644_v10 }
  0xc4   : > { %v595_v36 = vadd.f32 %v594_v62, %v567_v20  ;;  %v2805_v62 = vld [vmem:[%s5040_s3 + $0x10] sm:$0xf]  ;;  %v2983_v20 = vld [vmem:[%s5040_s3 + $0x1c0] sm:$0xf0] }
  0xc5   : > { %v2986_v21 = vor.u32 %v3648_v19, %v2983_v20 }
  0xc6   : > { %v623_v58 = vadd.f32 %v4109_v57, %v595_v36  ;;  %v2790_v57 = vor.u32 %v3608_v61, %v2789_v59  ;;  %v2922_v36 = vor.u32 %v3632_v32, %v2919_v33  ;;  %v3021_v32 = vld [vmem:[%s5040_s3 + $0x1a8] sm:$0xf] }
  0xc7   : > { %v4131_v9 = vpop.f32.mrf.mxu2  ;;  %v3661_v33 = vld [vmem:[%s5040_s3 + $0x1e4] sm:$0xf0] }
  0xc8   : > { %1095 = vmatpush.bf16.msra.mxu3 %v2790_v57  ;;  %v638_v12 = vmax.f32 %v623_v58, 0.0 }
  0xc9   : > { %v568_v3 = vpop.f32.mrf.mxu0 }
  0xca   : > { %v596_v4 = vpop.f32.mrf.mxu1  ;;  %v569_v25 = vadd.f32 %v4116_v63, %v568_v3  ;;  %v3610_v3 = vld [vmem:[%s5040_s3 + $0x4c] sm:$0xf0] }
  0xcb   : > { %v2806_v6 = vor.u32 %v3610_v3, %v2805_v62  ;;  %v2898_v3 = vor.u32 %v3621_v55, %v2895_v56  ;;  %v2911_v55 = vld [vmem:[%s5040_s3 + $0xf8] sm:$0xf0] }
  0xcc   : > { %v597_v43 = vadd.f32 %v596_v4, %v569_v25  ;;  %v3603_v4 = vld [vmem:[%s5040_s3 + $0x1c] sm:$0xf]  ;;  %1105 = vmatpush.bf16.msrb.mxu3 %v2986_v21 }
  0xcd   : > { %1147 = vmatpush.bf16.msrb.mxu2 %v2806_v6  ;;  %v2813_v6 = vld [vmem:[%s5040_s3 + $0x18] sm:$0xf] }
  0xce   : > { %v625_v1 = vadd.f32 %v4111_v60, %v597_v43  ;;  %v2818_v60 = vor.u32 %v3603_v4, %v2815_v5  ;;  %v3616_v43 = vld [vmem:[%s5040_s3 + $0x84] sm:$0xf] }
  0xcf   : > { %v4184_v45 = vpop.f32.mrf.mxu2  ;;  %v2858_v53 = vor.u32 %v3616_v43, %v2855_v48  ;;  %v3600_v5 = vld [vmem:[%s5040_s3 + $0x4] sm:$0xf]  ;;  %v3645_v43 = vld [vmem:[%s5040_s3 + $0x164] sm:$0xf0] }
  0xd0   : > { %v639_v15 = vmax.f32 %v625_v1, 0.0  ;;  %1186 = vmatpush.bf16.msrb.mxu0 %v2818_v60  ;;  %1106 = vmatpush.bf16.msrb.mxu3 %v2922_v36  ;;  %v2901_v1 = vld [vmem:[%s5040_s3 + $0xb0] sm:$0xf]  ;;  %v3039_v36 = vld [vmem:[%s5040_s3 + $0x1f8] sm:$0xf0] }
  0xd1   : > { %v571_v37 = vpop.f32.mrf.mxu0  ;;  %1170 = vmatpush.bf16.msra.mxu2 %v3006_v26 }
  0xd2   : > { %v599_v38 = vpop.f32.mrf.mxu1  ;;  %v572_v44 = vadd.f32 %v4116_v63, %v571_v37  ;;  %v3643_v37 = vld [vmem:[%s5040_s3 + $0x154] sm:$0xf0]  ;;  %v649_v46 = vsel %vm643_vm1, %v639_v15, 0.0 }
  0xd3   : > { %v2942_v40 = vor.u32 %v3643_v37, %v2941_v34 }
  0xd4   : > { %v600_v54 = vadd.f32 %v599_v38, %v572_v44  ;;  %v3637_v38 = vld [vmem:[%s5040_s3 + $0x12c] sm:$0xf]  ;;  %1235 = vmatpush.bf16.msra.mxu0 %v3026_v30  ;;  %v647_v44 = vsel %vm643_vm1, %v638_v12, 0.0  ;;  %1107 = vmatpush.bf16.msrb.mxu3 %v2858_v53  ;;  %v2837_v12 = vld [vmem:[%s5040_s3 + $0x30] sm:$0xf] }
  0xd5   : > { %v2962_v41 = vor.u32 %v3637_v38, %v2959_v39  ;;  %1171 = vmatpush.bf16.msra.mxu2 %v2942_v40  ;;  %v648_v57 = vadd.f32 %v647_v44, %v646_v50  ;;  %v2989_v30 = vld [vmem:[%s5040_s3 + $0x188] sm:$0xf]  ;;  %v3022_v39 = vor.u32 %v3661_v33, %v3021_v32  ;;  %v3639_v44 = vld [vmem:[%s5040_s3 + $0x13c] sm:$0xf]  ;;  %v2935_v32 = vld [vmem:[%s5040_s3 + $0x150] sm:$0xf0] }
  0xd6   : > { %v4213_v2 = vadd.f32 %v4118_v0, %v600_v54  ;;  %v2821_v0 = vld [vmem:[%s5040_s3 + $0x20] sm:$0xf]  ;;  %v3627_v54 = vld [vmem:[%s5040_s3 + $0xd4] sm:$0xf0]  ;;  %v2925_v40 = vld [vmem:[%s5040_s3 + $0x108] sm:$0xf] }
  0xd7   : > { %v2822_v8 = vor.u32 %v3612_v7, %v2821_v0  ;;  %v634_v18 = vpop.f32.mrf.mxu2  ;;  %v2878_v62 = vor.u32 %v3627_v54, %v2877_v49  ;;  %v3611_v0 = vld [vmem:[%s5040_s3 + $0x54] sm:$0xf0]  ;;  %v3605_v7 = vld [vmem:[%s5040_s3 + $0x2c] sm:$0xf]  ;;  %v650_v10 = vadd.f32 %v649_v46, %v648_v57  ;;  %v2975_v46 = vld [vmem:[%s5040_s3 + $0x178] sm:$0xf0] }
  0xd8   : > { %v640_v16 = vmax.f32 %v4213_v2, 0.0  ;;  %v3630_v2 = vld [vmem:[%s5040_s3 + $0xec] sm:$0xf0]  ;;  %1236 = vmatpush.bf16.msra.mxu0 %v2962_v41  ;;  %v2861_v49 = vld [vmem:[%s5040_s3 + $0x88] sm:$0xf]  ;;  %v2978_v50 = vor.u32 %v3639_v44, %v2975_v46  ;;  %v3671_v46 = vld [vmem:[%s5042_s5 + $0x38] sm:$0xff] }
  0xd9   : > { %v573_v13 = vpop.f32.mrf.mxu0  ;;  %1199 = vmatpush.bf16.msrb.mxu1 %v2822_v8  ;;  %v2902_v4 = vor.u32 %v3630_v2, %v2901_v1  ;;  %v2831_v8 = vld [vmem:[%s5040_s3 + $0x68] sm:$0xf0]  ;;  %1172 = vmatpush.bf16.msra.mxu2 %v2878_v62  ;;  %v3629_v53 = vld [vmem:[%s5040_s3 + $0xe4] sm:$0xf0]  ;;  %v3623_v54 = vld [vmem:[%s5040_s3 + $0xbc] sm:$0xf] }
  0xda   : > { %v601_v14 = vpop.f32.mrf.mxu1  ;;  %v574_v17 = vadd.f32 %v4116_v63, %v573_v13  ;;  %v651_v58 = vsel %vm643_vm1, %v640_v16, 0.0  ;;  %v3614_v13 = vld [vmem:[%s5040_s3 + $0x6c] sm:$0xf0]  ;;  %v2814_v16 = vor.u32 %v3611_v0, %v2813_v6  ;;  %v2834_v18 = vor.u32 %v3605_v7, %v2831_v8  ;;  %v3609_v62 = vld [vmem:[%s5040_s3 + $0x44] sm:$0xf0] }
  0xdb   : > { %v2838_v19 = vor.u32 %v3614_v13, %v2837_v12  ;;  %v2829_v1 = vld [vmem:[%s5040_s3 + $0x28] sm:$0xf]  ;;  %v3607_v57 = vld [vmem:[%s5040_s3 + $0x3c] sm:$0xf]  ;;  %v3037_v0 = vld [vmem:[%s5040_s3 + $0x1b8] sm:$0xf] }
  0xdc   : > { %v602_v25 = vadd.f32 %v601_v14, %v574_v17  ;;  %v652_v17 = vadd.f32 %v651_v58, %v650_v10  ;;  %1237 = vmatpush.bf16.msra.mxu0 %v2898_v3  ;;  %v3613_v2 = vld [vmem:[%s5040_s3 + $0x64] sm:$0xf0]  ;;  %v2847_v3 = vld [vmem:[%s5040_s3 + $0x78] sm:$0xf0]  ;;  %v3663_v7 = vld [vmem:[%s5040_s3 + $0x1f4] sm:$0xf0] }
  0xdd   : > { %1248 = vmatpush.bf16.msra.mxu1 %v3030_v31  ;;  %1173 = vmatpush.bf16.msra.mxu2 %v2814_v16  ;;  %v3657_v31 = vld [vmem:[%s5040_s3 + $0x1c4] sm:$0xf0]  ;;  %v2850_v6 = vor.u32 %v3607_v57, %v2847_v3  ;;  %v3038_v10 = vor.u32 %v3663_v7, %v3037_v0  ;;  %v2927_v12 = vld [vmem:[%s5040_s3 + $0x148] sm:$0xf0]  ;;  %v2973_v13 = vld [vmem:[%s5040_s3 + $0x138] sm:$0xf] }
  0xde   : > { %v630_v35 = vadd.f32 %v4131_v9, %v602_v25  ;;  %v2965_v9 = vld [vmem:[%s5040_s3 + $0x130] sm:$0xf]  ;;  %v2990_v38 = vor.u32 %v3657_v31, %v2989_v30  ;;  %v3634_v31 = vld [vmem:[%s5040_s3 + $0x114] sm:$0xf]  ;;  %v2951_v44 = vld [vmem:[%s5040_s3 + $0x160] sm:$0xf0] }
  0xdf   : > { %v2966_v47 = vor.u32 %v3646_v42, %v2965_v9  ;;  %v3641_v9 = vld [vmem:[%s5040_s3 + $0x144] sm:$0xf0]  ;;  %v2938_v33 = vor.u32 %v3634_v31, %v2935_v32  ;;  %v3666_v3 = vld [vmem:[%s5042_s5 + $0x10] sm:$0xff]  ;;  %v3696_v31 = vld [vmem:[%s5042_s5 + $0x100] sm:$0xff] }
  0xe0   : > { %v641_v59 = vmax.f32 %v630_v35, 0.0  ;;  %1238 = vmatpush.bf16.msra.mxu0 %v2834_v18  ;;  %v3655_v35 = vld [vmem:[%s5040_s3 + $0x1bc] sm:$0xf]  ;;  %v2957_v42 = vld [vmem:[%s5040_s3 + $0x128] sm:$0xf] }
  0xe1   : > { %v576_v51 = vpop.f32.mrf.mxu0  ;;  %1249 = vmatpush.bf16.msra.mxu1 %v2966_v47  ;;  %v3042_v41 = vor.u32 %v3655_v35, %v3039_v36  ;;  %v2926_v47 = vor.u32 %v3641_v9, %v2925_v40  ;;  %v2958_v48 = vor.u32 %v3645_v43, %v2957_v42  ;;  %v2863_v18 = vld [vmem:[%s5040_s3 + $0xc8] sm:$0xf0]  ;;  %v2871_v35 = vld [vmem:[%s5040_s3 + $0xd0] sm:$0xf0]  ;;  %v3015_v9 = vld [vmem:[%s5040_s3 + $0x1e0] sm:$0xf0] }
  0xe2   : > { %v604_v52 = vpop.f32.mrf.mxu1  ;;  %v577_v61 = vadd.f32 %v4116_v63, %v576_v51  ;;  %v2791_v63 = vld [vmem:[%s5040_s3 + $0x40] sm:$0xf0]  ;;  %v653_v14 = vsel %vm643_vm1, %v641_v59, 0.0  ;;  %v3625_v51 = vld [vmem:[%s5040_s3 + $0xc4] sm:$0xf0] }
  0xe3   : > { %v2794_v11 = vor.u32 %v3600_v5, %v2791_v63  ;;  %v654_v21 = vadd.f32 %v653_v14, %v652_v17  ;;  %v2862_v56 = vor.u32 %v3625_v51, %v2861_v49  ;;  %v2797_v59 = vld [vmem:[%s5040_s3 + $0x8] sm:$0xf]  ;;  %v2830_v5 = vor.u32 %v3613_v2, %v2829_v1  ;;  %v3649_v63 = vld [vmem:[%s5040_s3 + $0x18c] sm:$0xf]  ;;  %v3647_v14 = vld [vmem:[%s5040_s3 + $0x174] sm:$0xf0] }
  0xe4   : > { %v605_v60 = vadd.f32 %v604_v52, %v577_v61  ;;  %v2893_v52 = vld [vmem:[%s5040_s3 + $0xa8] sm:$0xf]  ;;  %v2914_v61 = vor.u32 %v3623_v54, %v2911_v55  ;;  %v2974_v16 = vor.u32 %v3647_v14, %v2973_v13  ;;  %v3617_v17 = vld [vmem:[%s5040_s3 + $0x8c] sm:$0xf]  ;;  %v3636_v43 = vld [vmem:[%s5040_s3 + $0x124] sm:$0xf] }
  0xe5   : > { %1250 = vmatpush.bf16.msra.mxu1 %v2902_v4  ;;  %1108 = vmatpush.bf16.msrb.mxu3 %v2794_v11  ;;  %v2894_v58 = vor.u32 %v3629_v53, %v2893_v52  ;;  %v2798_v4 = vor.u32 %v3609_v62, %v2797_v59  ;;  %v3633_v11 = vld [vmem:[%s5040_s3 + $0x10c] sm:$0xf]  ;;  %v3620_v49 = vld [vmem:[%s5040_s3 + $0xa4] sm:$0xf]  ;;  %v3031_v59 = vld [vmem:[%s5040_s3 + $0x1f0] sm:$0xf0] }
  0xe6   : > { %v633_v15 = vadd.f32 %v4184_v45, %v605_v60  ;;  %v2991_v60 = vld [vmem:[%s5040_s3 + $0x1c8] sm:$0xf0]  ;;  %v3604_v53 = vld [vmem:[%s5040_s3 + $0x24] sm:$0xf]  ;;  %v3638_v62 = vld [vmem:[%s5040_s3 + $0x134] sm:$0xf] }
  0xe7   : > { %v2994_v8 = vor.u32 %v3649_v63, %v2991_v60  ;;  %v3669_v52 = vld [vmem:[%s5042_s5 + $0x28] sm:$0xff]  ;;  %v2823_v54 = vld [vmem:[%s5040_s3 + $0x60] sm:$0xf0]  ;;  %v2967_v1 = vld [vmem:[%s5040_s3 + $0x170] sm:$0xf0] }
  0xe8   : > { %v642_v20 = vmax.f32 %v633_v15, 0.0  ;;  %v2930_v15 = vor.u32 %v3633_v11, %v2927_v12  ;;  %v2826_v55 = vor.u32 %v3604_v53, %v2823_v54  ;;  %v3667_v2 = vld [vmem:[%s5042_s5 + $0x18] sm:$0xff]  ;;  %v2970_v57 = vor.u32 %v3638_v62, %v2967_v1  ;;  %v2903_v63 = vld [vmem:[%s5040_s3 + $0xf0] sm:$0xf0]  ;;  %v3665_v0 = vld [vmem:[%s5042_s5 + $0x8] sm:$0xff] }
  0xe9   : > { %v578_v22 = vpop.f32.mrf.mxu0  ;;  %1251 = vmatpush.bf16.msra.mxu1 %v2838_v19  ;;  %v2909_v19 = vld [vmem:[%s5040_s3 + $0xb8] sm:$0xf]  ;;  %v3606_v7 = vld [vmem:[%s5040_s3 + $0x34] sm:$0xf]  ;;  %v3664_v12 = vld [vmem:[%s5042_s5] sm:$0xff] }
  0xea   : > { %v606_v23 = vpop.f32.mrf.mxu1  ;;  %v656_v24 = vsel %vm655_vm2, %v642_v20, 0.0  ;;  %v3631_v20 = vld [vmem:[%s5040_s3 + $0xf4] sm:$0xf0]  ;;  %v3684_v14 = vld [vmem:[%s5042_s5 + $0xa0] sm:$0xff]  ;;  %v3673_v32 = vld [vmem:[%s5042_s5 + $0x48] sm:$0xff] }
  0xeb   : > { %v657_v25 = vadd.f32 %v656_v24, %v654_v21  ;;  %v2866_v21 = vor.u32 %v3617_v17, %v2863_v18  ;;  %v2910_v22 = vor.u32 %v3631_v20, %v2909_v19  ;;  %v3601_v23 = vld [vmem:[%s5040_s3 + $0xc] sm:$0xf]  ;;  %v3703_v13 = vld [vmem:[%s5042_s5 + $0x138] sm:$0xff]  ;;  %v3678_v17 = vld [vmem:[%s5042_s5 + $0x70] sm:$0xff] }
  0xec   : > { %v2799_v24 = vld [vmem:[%s5040_s3 + $0x48] sm:$0xf0]  ;;  %v3700_v20 = vld [vmem:[%s5042_s5 + $0x120] sm:$0xff] }
  0xed   : > { %v658_v26 = vrot.slane %v657_v25, 4  ;;  %v3701_v18 = vld [vmem:[%s5042_s5 + $0x128] sm:$0xff] }
  0xee   : > { %v3677_v19 = vld [vmem:[%s5042_s5 + $0x68] sm:$0xff] }
  0xef   : > { %v659_v45 = vadd.f32 %v658_v26, %v657_v25  ;;  %v2845_v25 = vld [vmem:[%s5040_s3 + $0x38] sm:$0xf] }
  0xf0   : > { %v3615_v26 = vld [vmem:[%s5040_s3 + $0x74] sm:$0xf0] }
  0xf1   : > { %v660_v27 = vrot.slane %v659_v45, 2 }
  0xf3   : > { %v661_v28 = vadd.f32 %v660_v27, %v659_v45  ;;  %v2802_v45 = vor.u32 %v3601_v23, %v2799_v24  ;;  %v2846_v27 = vor.u32 %v3615_v26, %v2845_v25  ;;  %v3683_v23 = vld [vmem:[%s5042_s5 + $0x98] sm:$0xff]  ;;  %v3698_v25 = vld [vmem:[%s5042_s5 + $0x110] sm:$0xff] }
  0xf4   : > { %v3695_v24 = vld [vmem:[%s5042_s5 + $0xf8] sm:$0xff] }
  0xf5   : > { %v662_v29 = vrot.slane %v661_v28, 1  ;;  %v3675_v26 = vld [vmem:[%s5042_s5 + $0x58] sm:$0xff] }
  0xf7   : > { %v663_v34 = vadd.f32 %v662_v29, %v661_v28  ;;  %v3650_v28 = vld [vmem:[%s5040_s3 + $0x194] sm:$0xf] }
  0xf8   : > { %v2999_v29 = vld [vmem:[%s5040_s3 + $0x1d0] sm:$0xf0] }
  0xf9   : > { %v4355_v37 = vpack.c.bf16 %v663_v34, %v663_v34  ;;  %v3002_v30 = vor.u32 %v3650_v28, %v2999_v29  ;;  %v3618_v34 = vld [vmem:[%s5040_s3 + $0x94] sm:$0xf]  ;;  %v3681_v29 = vld [vmem:[%s5042_s5 + $0x88] sm:$0xff] }
  0xfa   : > { %v2874_v36 = vor.u32 %v3618_v34, %v2871_v35  ;;  %v3674_v28 = vld [vmem:[%s5042_s5 + $0x50] sm:$0xff]  ;;  %v3692_v34 = vld [vmem:[%s5042_s5 + $0xe0] sm:$0xff]  ;;  %v3719_v35 = vld [vmem:[%s5042_s5 + $0x1b8] sm:$0xff] }
  0xfb   : > { %3043 = vmatmul.msk.bf16.vlgmr.msra.gmra.mxu3 %vm643_vm1, %v4355_v37  ;;  %3047 = vmatmul.msk.bf16.vlgmr.msrb.gmra.mxu2 %vm643_vm1, %v4355_v37 }
  0xfc   : > { %3050 = vmatmul.msk.bf16.vlgmr.msrb.gmra.mxu0 %vm643_vm1, %v4355_v37  ;;  %3051 = vmatmul.msk.bf16.vlgmr.msrb.gmra.mxu1 %vm643_vm1, %v4355_v37 }
  0xfd   : > { %1118 = vmatpush.bf16.msra.mxu3 %v2990_v38  ;;  %1222 = vmatpush.bf16.msrb.mxu2 %v3022_v39  ;;  %v3602_v38 = vld [vmem:[%s5040_s3 + $0x14] sm:$0xf] }
  0xfe   : > { %1287 = vmatpush.bf16.msrb.mxu0 %v3042_v41  ;;  %v2807_v39 = vld [vmem:[%s5040_s3 + $0x50] sm:$0xf0]  ;;  %v3652_v41 = vld [vmem:[%s5040_s3 + $0x1a4] sm:$0xf]  ;;  %2353 = vmatpush.bf16.msrb.mxu1 %v3671_v46  ;;  %v3709_v46 = vld [vmem:[%s5042_s5 + $0x168] sm:$0xff] }
  0xff   : > { %v2810_v40 = vor.u32 %v3602_v38, %v2807_v39  ;;  %v3018_v42 = vor.u32 %v3652_v41, %v3015_v9  ;;  %v3691_v38 = vld [vmem:[%s5042_s5 + $0xd8] sm:$0xff]  ;;  %v3690_v41 = vld [vmem:[%s5042_s5 + $0xd0] sm:$0xff] }
 0x100   : > { %v3711_v39 = vld [vmem:[%s5042_s5 + $0x178] sm:$0xff]  ;;  %v3710_v9 = vld [vmem:[%s5042_s5 + $0x170] sm:$0xff] }
 0x101   : > { %1119 = vmatpush.bf16.msra.mxu3 %v2926_v47  ;;  %1223 = vmatpush.bf16.msrb.mxu2 %v2958_v48  ;;  %v2954_v47 = vor.u32 %v3636_v43, %v2951_v44  ;;  %v3670_v48 = vld [vmem:[%s5042_s5 + $0x30] sm:$0xff]  ;;  %v3689_v43 = vld [vmem:[%s5042_s5 + $0xc8] sm:$0xff]  ;;  %v4698_v44 = vld [vmem:[%s5041_s4] sm:$0xff] }
 0x102   : > { %1288 = vmatpush.bf16.msrb.mxu0 %v2978_v50  ;;  %v2887_v50 = vld [vmem:[%s5040_s3 + $0xe0] sm:$0xf0]  ;;  %2354 = vmatpush.bf16.msrb.mxu1 %v3670_v48  ;;  %v1060_v48 = vperm.slane %v4698_v44, 7 }
 0x103   : > { %v2890_v51 = vor.u32 %v3620_v49, %v2887_v50  ;;  %v3688_v49 = vld [vmem:[%s5042_s5 + $0xc0] sm:$0xff] }
 0x104   : > { %v3708_v50 = vld [vmem:[%s5042_s5 + $0x160] sm:$0xff] }
 0x105   : > { %1120 = vmatpush.bf16.msra.mxu3 %v2862_v56  ;;  %1224 = vmatpush.bf16.msrb.mxu2 %v2894_v58  ;;  %v3668_v56 = vld [vmem:[%s5042_s5 + $0x20] sm:$0xff]  ;;  %v3654_v58 = vld [vmem:[%s5040_s3 + $0x1b4] sm:$0xf] }
 0x106   : > { %1289 = vmatpush.bf16.msrb.mxu0 %v2914_v61  ;;  %2355 = vmatpush.bf16.msrb.mxu1 %v3669_v52  ;;  %v3034_v61 = vor.u32 %v3654_v58, %v3031_v59  ;;  %v3727_v52 = vld [vmem:[%s5042_s5 + $0x1f8] sm:$0xff]  ;;  %v3714_v59 = vld [vmem:[%s5042_s5 + $0x190] sm:$0xff] }
 0x107   : > { %v3707_v58 = vld [vmem:[%s5042_s5 + $0x158] sm:$0xff] }
 0x109   : > { %1121 = vmatpush.bf16.msra.mxu3 %v2798_v4  ;;  %1225 = vmatpush.bf16.msrb.mxu2 %v2830_v5  ;;  %v3687_v4 = vld [vmem:[%s5042_s5 + $0xb8] sm:$0xff]  ;;  %v3622_v5 = vld [vmem:[%s5040_s3 + $0xb4] sm:$0xf] }
 0x10a   : > { %1290 = vmatpush.bf16.msrb.mxu0 %v2850_v6  ;;  %2356 = vmatpush.bf16.msrb.mxu1 %v3668_v56  ;;  %v3686_v6 = vld [vmem:[%s5042_s5 + $0xb0] sm:$0xff]  ;;  %v2906_v60 = vor.u32 %v3622_v5, %v2903_v63  ;;  %v1053_v56 = vperm.slane %v4698_v44, 0 }
 0x10b   : > { %3044 = vmatmul.msk.bf16.vlgmr.msrb.gmra.mxu3 %vm643_vm1, %v4355_v37  ;;  %3049 = vmatmul.msk.bf16.vlgmr.msra.gmra.mxu2 %vm643_vm1, %v4355_v37 }
 0x10c   : > { %3054 = vmatmul.msk.bf16.vlgmr.msra.gmra.mxu0 %vm643_vm1, %v4355_v37  ;;  %3055 = vmatmul.msk.bf16.vlgmr.msra.gmra.mxu1 %vm643_vm1, %v4355_v37 }
 0x10d   : > { %1131 = vmatpush.bf16.msrb.mxu3 %v2994_v8  ;;  %1274 = vmatpush.bf16.msra.mxu2 %v3038_v10  ;;  %v2839_v8 = vld [vmem:[%s5040_s3 + $0x70] sm:$0xf0]  ;;  %v3685_v10 = vld [vmem:[%s5042_s5 + $0xa8] sm:$0xff] }
 0x10e   : > { %2357 = vmatpush.bf16.msrb.mxu1 %v3667_v2  ;;  %v2842_v11 = vor.u32 %v3606_v7, %v2839_v8  ;;  %2392 = vmatpush.bf16.msra.mxu0 %v3695_v24  ;;  %v3705_v7 = vld [vmem:[%s5042_s5 + $0x148] sm:$0xff]  ;;  %v3712_v8 = vld [vmem:[%s5042_s5 + $0x180] sm:$0xff] }
 0x111   : > { %1132 = vmatpush.bf16.msrb.mxu3 %v2930_v15  ;;  %1275 = vmatpush.bf16.msra.mxu2 %v2974_v16  ;;  %v3679_v15 = vld [vmem:[%s5042_s5 + $0x78] sm:$0xff]  ;;  %v3702_v16 = vld [vmem:[%s5042_s5 + $0x130] sm:$0xff] }
 0x112   : > { %2358 = vmatpush.bf16.msrb.mxu1 %v3666_v3  ;;  %v3713_v3 = vld [vmem:[%s5042_s5 + $0x188] sm:$0xff] }
 0x115   : > { %1133 = vmatpush.bf16.msrb.mxu3 %v2866_v21  ;;  %1276 = vmatpush.bf16.msra.mxu2 %v2910_v22  ;;  %v3699_v21 = vld [vmem:[%s5042_s5 + $0x118] sm:$0xff]  ;;  %v3676_v22 = vld [vmem:[%s5042_s5 + $0x60] sm:$0xff] }
 0x116   : > { %2359 = vmatpush.bf16.msrb.mxu1 %v3665_v0 }
 0x119   : > { %1134 = vmatpush.bf16.msrb.mxu3 %v2802_v45  ;;  %1277 = vmatpush.bf16.msra.mxu2 %v2846_v27  ;;  %v3682_v45 = vld [vmem:[%s5042_s5 + $0x90] sm:$0xff]  ;;  %v3697_v27 = vld [vmem:[%s5042_s5 + $0x108] sm:$0xff] }
 0x11a   : > { %2360 = vmatpush.bf16.msrb.mxu1 %v3664_v12 }
 0x11b   : > { %3045 = vmatmul.msk.bf16.vlgmr.msra.gmra.mxu3 %vm643_vm1, %v4355_v37  ;;  %3053 = vmatmul.msk.bf16.vlgmr.msrb.gmra.mxu2 %vm643_vm1, %v4355_v37 }
 0x11c   : > { %3058 = vmatmul.msk.bf16.vlgmr.msrb.gmra.mxu0 %vm643_vm1, %v4355_v37 }
 0x11d   : > { %1157 = vmatpush.bf16.msra.mxu3 %v3002_v30  ;;  %2379 = vmatpush.bf16.msrb.mxu2 %v3687_v4  ;;  %v3693_v30 = vld [vmem:[%s5042_s5 + $0xe8] sm:$0xff] }
 0x11e   : > { %2405 = vmatpush.bf16.msra.mxu1 %v3703_v13  ;;  %v3725_v4 = vld [vmem:[%s5042_s5 + $0x1e8] sm:$0xff]  ;;  %v3734_v13 = vld [vmem:[%s5042_s5 + $0x230] sm:$0xff] }
 0x121   : > { %1158 = vmatpush.bf16.msra.mxu3 %v2938_v33  ;;  %2380 = vmatpush.bf16.msrb.mxu2 %v3686_v6  ;;  %v3680_v33 = vld [vmem:[%s5042_s5 + $0x80] sm:$0xff] }
 0x122   : > { %2406 = vmatpush.bf16.msra.mxu1 %v3702_v16  ;;  %v3723_v16 = vld [vmem:[%s5042_s5 + $0x1d8] sm:$0xff] }
 0x125   : > { %1159 = vmatpush.bf16.msra.mxu3 %v2874_v36  ;;  %2381 = vmatpush.bf16.msrb.mxu2 %v3685_v10  ;;  %v3672_v36 = vld [vmem:[%s5042_s5 + $0x40] sm:$0xff] }
 0x126   : > { %2407 = vmatpush.bf16.msra.mxu1 %v3701_v18  ;;  %v3724_v10 = vld [vmem:[%s5042_s5 + $0x1e0] sm:$0xff] }
 0x129   : > { %1160 = vmatpush.bf16.msra.mxu3 %v2810_v40  ;;  %2382 = vmatpush.bf16.msrb.mxu2 %v3684_v14  ;;  %v3718_v40 = vld [vmem:[%s5042_s5 + $0x1b0] sm:$0xff]  ;;  %v1057_v14 = vperm.slane %v4698_v44, 4 }
 0x12a   : > { %2408 = vmatpush.bf16.msra.mxu1 %v3700_v20 }
 0x12b   : > { %3046 = vmatmul.msk.bf16.vlgmr.msrb.gmra.mxu3 %vm643_vm1, %v4355_v37  ;;  %3057 = vmatmul.msk.bf16.vlgmr.msra.gmra.mxu2 %vm643_vm1, %v4355_v37 }
 0x12d   : > { %1209 = vmatpush.bf16.msrb.mxu3 %v3018_v42  ;;  %2383 = vmatpush.bf16.msrb.mxu2 %v3683_v23  ;;  %v3717_v42 = vld [vmem:[%s5042_s5 + $0x1a8] sm:$0xff] }
 0x12e   : > { %2409 = vmatpush.bf16.msra.mxu1 %v3699_v21  ;;  %v1054_v21 = vperm.slane %v4698_v44, 1 }
 0x131   : > { %1210 = vmatpush.bf16.msrb.mxu3 %v2954_v47  ;;  %2384 = vmatpush.bf16.msrb.mxu2 %v3682_v45  ;;  %v3716_v47 = vld [vmem:[%s5042_s5 + $0x1a0] sm:$0xff] }
 0x132   : > { %2410 = vmatpush.bf16.msra.mxu1 %v3698_v25  ;;  %v3732_v25 = vld [vmem:[%s5042_s5 + $0x220] sm:$0xff] }
 0x135   : > { %1211 = vmatpush.bf16.msrb.mxu3 %v2890_v51  ;;  %2385 = vmatpush.bf16.msrb.mxu2 %v3681_v29  ;;  %v3715_v51 = vld [vmem:[%s5042_s5 + $0x198] sm:$0xff] }
 0x136   : > { %2411 = vmatpush.bf16.msra.mxu1 %v3697_v27 }
 0x139   : > { %1212 = vmatpush.bf16.msrb.mxu3 %v2826_v55  ;;  %2386 = vmatpush.bf16.msrb.mxu2 %v3680_v33 }
 0x13a   : > { %2412 = vmatpush.bf16.msra.mxu1 %v3696_v31  ;;  %v3743_v31 = vld [vmem:[%s5042_s5 + $0x278] sm:$0xff] }
 0x13b   : > { %3048 = vmatmul.msk.bf16.vlgmr.msra.gmra.mxu3 %vm643_vm1, %v4355_v37 }
 0x13d   : > { %1261 = vmatpush.bf16.msra.mxu3 %v3034_v61  ;;  %2431 = vmatpush.bf16.msra.mxu2 %v3719_v35  ;;  %v3726_v61 = vld [vmem:[%s5042_s5 + $0x1f0] sm:$0xff]  ;;  %v4795_v35 = vld [vmem:[%s5041_s4 + $0x8] sm:$0xff] }
 0x141   : > { %1262 = vmatpush.bf16.msra.mxu3 %v2970_v57  ;;  %2432 = vmatpush.bf16.msra.mxu2 %v3718_v40  ;;  %v3706_v57 = vld [vmem:[%s5042_s5 + $0x150] sm:$0xff] }
 0x142   : > { %v3742_v40 = vld [vmem:[%s5042_s5 + $0x270] sm:$0xff] }
 0x145   : > { %1263 = vmatpush.bf16.msra.mxu3 %v2906_v60  ;;  %2433 = vmatpush.bf16.msra.mxu2 %v3717_v42  ;;  %v3735_v60 = vld [vmem:[%s5042_s5 + $0x238] sm:$0xff]  ;;  %v3729_v42 = vld [vmem:[%s5042_s5 + $0x208] sm:$0xff] }
 0x149   : > { %1264 = vmatpush.bf16.msra.mxu3 %v2842_v11  ;;  %2434 = vmatpush.bf16.msra.mxu2 %v3716_v47  ;;  %v1055_v47 = vperm.slane %v4698_v44, 2 }
 0x14b   : > { %3052 = vmatmul.msk.bf16.vlgmr.msrb.gmra.mxu3 %vm643_vm1, %v4355_v37 }
 0x14d   : > { %2366 = vmatpush.bf16.msrb.mxu3 %v3679_v15  ;;  %2435 = vmatpush.bf16.msra.mxu2 %v3715_v51  ;;  %v3704_v15 = vld [vmem:[%s5042_s5 + $0x140] sm:$0xff] }
 0x14e   : > { %v3740_v51 = vld [vmem:[%s5042_s5 + $0x260] sm:$0xff] }
 0x151   : > { %2367 = vmatpush.bf16.msrb.mxu3 %v3678_v17  ;;  %2436 = vmatpush.bf16.msra.mxu2 %v3714_v59  ;;  %v3751_v59 = vld [vmem:[%s5042_s5 + $0x2b8] sm:$0xff] }
 0x155   : > { %2368 = vmatpush.bf16.msrb.mxu3 %v3677_v19  ;;  %2437 = vmatpush.bf16.msra.mxu2 %v3713_v3  ;;  %v3733_v19 = vld [vmem:[%s5042_s5 + $0x228] sm:$0xff] }
 0x159   : > { %2369 = vmatpush.bf16.msrb.mxu3 %v3676_v22  ;;  %2438 = vmatpush.bf16.msra.mxu2 %v3712_v8  ;;  %v3722_v22 = vld [vmem:[%s5042_s5 + $0x1d0] sm:$0xff]  ;;  %v1056_v8 = vperm.slane %v4698_v44, 3 }
 0x15b   : > { %3056 = vmatmul.msk.bf16.vlgmr.msra.gmra.mxu3 %vm643_vm1, %v4355_v37  ;;  %v3694_v37 = vld [vmem:[%s5042_s5 + $0xf0] sm:$0xff] }
 0x15c   : > { %2393 = vmatpush.bf16.msra.mxu0 %v3694_v37  ;;  %v3721_v37 = vld [vmem:[%s5042_s5 + $0x1c8] sm:$0xff] }
 0x15d   : > { %2370 = vmatpush.bf16.msrb.mxu3 %v3675_v26 }
 0x160   : > { %2394 = vmatpush.bf16.msra.mxu0 %v3693_v30  ;;  %v3731_v30 = vld [vmem:[%s5042_s5 + $0x218] sm:$0xff] }
 0x161   : > { %2371 = vmatpush.bf16.msrb.mxu3 %v3674_v28 }
 0x164   : > { %2395 = vmatpush.bf16.msra.mxu0 %v3692_v34  ;;  %v3720_v34 = vld [vmem:[%s5042_s5 + $0x1c0] sm:$0xff] }
 0x165   : > { %2372 = vmatpush.bf16.msrb.mxu3 %v3673_v32 }
 0x168   : > { %2396 = vmatpush.bf16.msra.mxu0 %v3691_v38 }
 0x169   : > { %2373 = vmatpush.bf16.msrb.mxu3 %v3672_v36 }
 0x16c   : > { %2397 = vmatpush.bf16.msra.mxu0 %v3690_v41  ;;  %v1061_v41 = vperm.slane %v4795_v35, 0 }
 0x16d   : > { %2418 = vmatpush.bf16.msra.mxu3 %v3711_v39  ;;  %v3730_v39 = vld [vmem:[%s5042_s5 + $0x210] sm:$0xff] }
 0x170   : > { %2398 = vmatpush.bf16.msra.mxu0 %v3689_v43  ;;  %v3741_v43 = vld [vmem:[%s5042_s5 + $0x268] sm:$0xff] }
 0x171   : > { %2419 = vmatpush.bf16.msra.mxu3 %v3710_v9 }
 0x174   : > { %2399 = vmatpush.bf16.msra.mxu0 %v3688_v49 }
 0x175   : > { %2420 = vmatpush.bf16.msra.mxu3 %v3709_v46 }
 0x178   : > { %2444 = vmatpush.bf16.msrb.mxu0 %v3727_v52 }
 0x179   : > { %v1188_v53 = vpop.f32.mrf.mxu0  ;;  %v4719_v54 = vpop.f32.mrf.mxu1  ;;  %2421 = vmatpush.bf16.msra.mxu3 %v3708_v50  ;;  %v3728_v50 = vld [vmem:[%s5042_s5 + $0x200] sm:$0xff] }
 0x17a   : > { %v4721_v55 = vadd.f32 %v1188_v53, %v1060_v48  ;;  %v1202_v46 = vadd.f32 %v4719_v54, %v1061_v41  ;;  %v3767_v54 = vld [vmem:[%s5042_s5 + $0x338] sm:$0xff]  ;;  %v3756_v41 = vld [vmem:[%s5042_s5 + $0x2e0] sm:$0xff] }
 0x17c   : > { %2445 = vmatpush.bf16.msrb.mxu0 %v3726_v61  ;;  %v1304_v52 = vmax.f32 %v1202_v46, 0.0  ;;  %v3739_v61 = vld [vmem:[%s5042_s5 + $0x258] sm:$0xff] }
 0x17d   : > { %2422 = vmatpush.bf16.msra.mxu3 %v3707_v58 }
 0x17e   : > { %v1097_v62 = vpop.f32.mrf.mxu3  ;;  %v1149_v1 = vpop.f32.mrf.mxu2 }
 0x17f   : > { %v1098_v2 = vadd.f32 %v1097_v62, %v1053_v56  ;;  %v1150_v20 = vadd.f32 %v1149_v1, %v1057_v14  ;;  %v1320_v62 = vpack.c.bf16 %v1304_v52, %v1304_v52  ;;  %v3736_v14 = vld [vmem:[%s5042_s5 + $0x240] sm:$0xff]  ;;  %v3782_v52 = vld [vmem:[%s5042_s5 + $0x3b0] sm:$0xff] }
 0x180   : > { %2446 = vmatpush.bf16.msrb.mxu0 %v3725_v4  ;;  %v3750_v4 = vld [vmem:[%s5042_s5 + $0x2b0] sm:$0xff] }
 0x181   : > { %v1296_v5 = vmax.f32 %v1098_v2, 0.0  ;;  %v1190_v63 = vpop.f32.mrf.mxu0  ;;  %v1203_v6 = vpop.f32.mrf.mxu1  ;;  %2423 = vmatpush.bf16.msra.mxu3 %v3706_v57  ;;  %v1300_v26 = vmax.f32 %v1150_v20, 0.0  ;;  %v3766_v2 = vld [vmem:[%s5042_s5 + $0x330] sm:$0xff] }
 0x182   : > { %v1059_v63 = vperm.slane %v4698_v44, 6  ;;  %v3765_v6 = vld [vmem:[%s5042_s5 + $0x328] sm:$0xff] }
 0x183   : > { %v1312_v0 = vpack.c.bf16 %v1296_v5, %v1296_v5  ;;  %v1316_v32 = vpack.c.bf16 %v1300_v26, %v1300_v26  ;;  %v3738_v5 = vld [vmem:[%s5042_s5 + $0x250] sm:$0xff]  ;;  %v1065_v26 = vperm.slane %v4795_v35, 4 }
 0x184   : > { %2447 = vmatpush.bf16.msrb.mxu0 %v3724_v10  ;;  %v3764_v10 = vld [vmem:[%s5042_s5 + $0x320] sm:$0xff] }
 0x185   : > { %2361 = vmatmul.bf16.vlgmr.msrb.gmra.mxu1 %v1312_v0  ;;  %2424 = vmatpush.bf16.msra.mxu3 %v3705_v7  ;;  %v3737_v0 = vld [vmem:[%s5042_s5 + $0x248] sm:$0xff] }
 0x186   : > { %2457 = vmatpush.bf16.msrb.mxu1 %v3735_v60  ;;  %v1099_v11 = vpop.f32.mrf.mxu3  ;;  %v1151_v12 = vpop.f32.mrf.mxu2  ;;  %v3749_v60 = vld [vmem:[%s5042_s5 + $0x2a8] sm:$0xff] }
 0x188   : > { %2448 = vmatpush.bf16.msrb.mxu0 %v3723_v16 }
 0x189   : > { %v4764_v17 = vpop.f32.mrf.mxu0  ;;  %v4766_v18 = vpop.f32.mrf.mxu1  ;;  %2425 = vmatpush.bf16.msra.mxu3 %v3704_v15 }
 0x18a   : > { %2458 = vmatpush.bf16.msrb.mxu1 %v3734_v13  ;;  %v3748_v13 = vld [vmem:[%s5042_s5 + $0x2a0] sm:$0xff] }
 0x18c   : > { %2449 = vmatpush.bf16.msrb.mxu0 %v3722_v22  ;;  %v3759_v22 = vld [vmem:[%s5042_s5 + $0x2f8] sm:$0xff] }
 0x18e   : > { %2459 = vmatpush.bf16.msrb.mxu1 %v3733_v19  ;;  %v1110_v23 = vpop.f32.mrf.mxu3  ;;  %v4775_v24 = vpop.f32.mrf.mxu2  ;;  %v3763_v19 = vld [vmem:[%s5042_s5 + $0x318] sm:$0xff] }
 0x18f   : > { %v1111_v45 = vadd.f32 %v1110_v23, %v1054_v21  ;;  %v1176_v7 = vadd.f32 %v4775_v24, %v1059_v63  ;;  %v3747_v21 = vld [vmem:[%s5042_s5 + $0x298] sm:$0xff] }
 0x190   : > { %2450 = vmatpush.bf16.msrb.mxu0 %v3721_v37 }
 0x191   : > { %v1297_v27 = vmax.f32 %v1111_v45, 0.0  ;;  %v1242_v28 = vpop.f32.mrf.mxu0  ;;  %v1255_v29 = vpop.f32.mrf.mxu1  ;;  %v1302_v15 = vmax.f32 %v1176_v7, 0.0 }
 0x192   : > { %2460 = vmatpush.bf16.msrb.mxu1 %v3732_v25  ;;  %v3762_v25 = vld [vmem:[%s5042_s5 + $0x310] sm:$0xff]  ;;  %v3761_v29 = vld [vmem:[%s5042_s5 + $0x308] sm:$0xff] }
 0x193   : > { %v1313_v33 = vpack.c.bf16 %v1297_v27, %v1297_v27  ;;  %v1318_v23 = vpack.c.bf16 %v1302_v15, %v1302_v15  ;;  %v3746_v27 = vld [vmem:[%s5042_s5 + $0x290] sm:$0xff] }
 0x194   : > { %2451 = vmatpush.bf16.msrb.mxu0 %v3720_v34  ;;  %v3758_v28 = vld [vmem:[%s5042_s5 + $0x2f0] sm:$0xff]  ;;  %v1058_v34 = vperm.slane %v4698_v44, 5  ;;  %v1303_v44 = vmax.f32 %v4721_v55, 0.0  ;;  %v3775_v55 = vld [vmem:[%s5042_s5 + $0x378] sm:$0xff] }
 0x195   : > { %2374 = vmatmul.bf16.vlgmr.msrb.gmra.mxu3 %v1313_v33  ;;  %2413 = vmatmul.bf16.vlgmr.msra.gmra.mxu1 %v1316_v32  ;;  %v3745_v32 = vld [vmem:[%s5042_s5 + $0x288] sm:$0xff]  ;;  %v3790_v15 = vld [vmem:[%s5042_s5 + $0x3f0] sm:$0xff] }
 0x196   : > { %2461 = vmatpush.bf16.msrb.mxu1 %v3731_v30  ;;  %v1112_v36 = vpop.f32.mrf.mxu3  ;;  %v1177_v38 = vpop.f32.mrf.mxu2  ;;  %2470 = vmatpush.bf16.msrb.mxu3 %v3743_v31  ;;  %v1063_v30 = vperm.slane %v4795_v35, 2  ;;  %v1254_v31 = vadd.f32 %v4766_v18, %v1065_v26  ;;  %v3757_v33 = vld [vmem:[%s5042_s5 + $0x2e8] sm:$0xff] }
 0x197   : > { %v3760_v36 = vld [vmem:[%s5042_s5 + $0x300] sm:$0xff] }
 0x198   : > { %v1308_v18 = vmax.f32 %v1254_v31, 0.0 }
 0x199   : > { %v4804_v9 = vpop.f32.mrf.mxu0 }
 0x19a   : > { %2462 = vmatpush.bf16.msrb.mxu1 %v3730_v39  ;;  %2471 = vmatpush.bf16.msrb.mxu3 %v3742_v40  ;;  %v3744_v40 = vld [vmem:[%s5042_s5 + $0x280] sm:$0xff] }
 0x19e   : > { %2463 = vmatpush.bf16.msrb.mxu1 %v3729_v42  ;;  %v1123_v48 = vpop.f32.mrf.mxu3  ;;  %v4814_v49 = vpop.f32.mrf.mxu2  ;;  %2472 = vmatpush.bf16.msrb.mxu3 %v3741_v43  ;;  %v3783_v43 = vld [vmem:[%s5042_s5 + $0x3b8] sm:$0xff] }
 0x19f   : > { %v1124_v53 = vadd.f32 %v1123_v48, %v1055_v47  ;;  %v1228_v38 = vadd.f32 %v4814_v49, %v1063_v30  ;;  %v1324_v47 = vpack.c.bf16 %v1308_v18, %v1308_v18  ;;  %v3755_v49 = vld [vmem:[%s5042_s5 + $0x2d8] sm:$0xff]  ;;  %v3784_v18 = vld [vmem:[%s5042_s5 + $0x3c0] sm:$0xff] }
 0x1a1   : > { %v1298_v56 = vmax.f32 %v1124_v53, 0.0  ;;  %v1294_v58 = vpop.f32.mrf.mxu0  ;;  %v1306_v46 = vmax.f32 %v1228_v38, 0.0 }
 0x1a2   : > { %2464 = vmatpush.bf16.msrb.mxu1 %v3728_v50  ;;  %2473 = vmatpush.bf16.msrb.mxu3 %v3740_v51  ;;  %v1319_v50 = vpack.c.bf16 %v1303_v44, %v1303_v44  ;;  %v1064_v58 = vperm.slane %v4795_v35, 3 }
 0x1a3   : > { %v1314_v1 = vpack.c.bf16 %v1298_v56, %v1298_v56  ;;  %v1322_v53 = vpack.c.bf16 %v1306_v46, %v1306_v46  ;;  %v3754_v56 = vld [vmem:[%s5042_s5 + $0x2d0] sm:$0xff] }
 0x1a5   : > { %2387 = vmatmul.bf16.vlgmr.msrb.gmra.mxu2 %v1314_v1  ;;  %2465 = vmatmul.bf16.vlgmr.msrb.gmra.mxu1 %v1320_v62  ;;  %v3753_v62 = vld [vmem:[%s5042_s5 + $0x2c8] sm:$0xff]  ;;  %v1241_v1 = vadd.f32 %v4764_v17, %v1064_v58 }
 0x1a6   : > { %2509 = vmatpush.bf16.msra.mxu1 %v3767_v54  ;;  %2483 = vmatpush.bf16.msrb.mxu2 %v3751_v59  ;;  %v1125_v57 = vpop.f32.mrf.mxu3  ;;  %v1229_v3 = vpop.f32.mrf.mxu2  ;;  %v3774_v59 = vld [vmem:[%s5042_s5 + $0x370] sm:$0xff] }
 0x1a7   : > { %2474 = vmatpush.bf16.msrb.mxu3 %v3739_v61  ;;  %v3781_v61 = vld [vmem:[%s5042_s5 + $0x3a8] sm:$0xff]  ;;  %v3780_v3 = vld [vmem:[%s5042_s5 + $0x3a0] sm:$0xff]  ;;  %v1307_v63 = vmax.f32 %v1241_v1, 0.0 }
 0x1a8   : > { %v3773_v57 = vld [vmem:[%s5042_s5 + $0x368] sm:$0xff] }
 0x1aa   : > { %2510 = vmatpush.bf16.msra.mxu1 %v3766_v2  ;;  %2484 = vmatpush.bf16.msrb.mxu2 %v3750_v4  ;;  %v1062_v2 = vperm.slane %v4795_v35, 1 }
 0x1ab   : > { %2475 = vmatpush.bf16.msrb.mxu3 %v3738_v5  ;;  %v3752_v5 = vld [vmem:[%s5042_s5 + $0x2c0] sm:$0xff] }
 0x1ae   : > { %2511 = vmatpush.bf16.msra.mxu1 %v3765_v6  ;;  %2485 = vmatpush.bf16.msrb.mxu2 %v3749_v60  ;;  %v1136_v11 = vpop.f32.mrf.mxu3  ;;  %v4855_v12 = vpop.f32.mrf.mxu2  ;;  %v3772_v6 = vld [vmem:[%s5042_s5 + $0x360] sm:$0xff]  ;;  %v3779_v60 = vld [vmem:[%s5042_s5 + $0x398] sm:$0xff] }
 0x1af   : > { %2476 = vmatpush.bf16.msrb.mxu3 %v3737_v0  ;;  %v1137_v16 = vadd.f32 %v1136_v11, %v1056_v8  ;;  %v3791_v0 = vld [vmem:[%s5042_s5 + $0x3f8] sm:$0xff]  ;;  %v1323_v8 = vpack.c.bf16 %v1307_v63, %v1307_v63 }
 0x1b0   : > { %v3771_v11 = vld [vmem:[%s5042_s5 + $0x358] sm:$0xff] }
 0x1b1   : > { %v1299_v20 = vmax.f32 %v1137_v16, 0.0 }
 0x1b2   : > { %2512 = vmatpush.bf16.msra.mxu1 %v3764_v10  ;;  %2486 = vmatpush.bf16.msrb.mxu2 %v3748_v13  ;;  %v3778_v13 = vld [vmem:[%s5042_s5 + $0x390] sm:$0xff] }
 0x1b3   : > { %2477 = vmatpush.bf16.msrb.mxu3 %v3736_v14  ;;  %v1315_v24 = vpack.c.bf16 %v1299_v20, %v1299_v20  ;;  %v1067_v14 = vperm.slane %v4795_v35, 6  ;;  %v3777_v20 = vld [vmem:[%s5042_s5 + $0x388] sm:$0xff] }
 0x1b5   : > { %2400 = vmatmul.bf16.vlgmr.msra.gmra.mxu0 %v1315_v24  ;;  %2439 = vmatmul.bf16.vlgmr.msra.gmra.mxu2 %v1318_v23  ;;  %v1066_v23 = vperm.slane %v4795_v35, 5  ;;  %v3769_v24 = vld [vmem:[%s5042_s5 + $0x348] sm:$0xff] }
 0x1b6   : > { %2513 = vmatpush.bf16.msra.mxu1 %v3763_v19  ;;  %2487 = vmatpush.bf16.msrb.mxu2 %v3747_v21  ;;  %v1138_v45 = vpop.f32.mrf.mxu3  ;;  %v1281_v37 = vpop.f32.mrf.mxu2  ;;  %v3770_v19 = vld [vmem:[%s5042_s5 + $0x350] sm:$0xff]  ;;  %v1280_v21 = vadd.f32 %v4855_v12, %v1067_v14  ;;  %v3788_v12 = vld [vmem:[%s5042_s5 + $0x3e0] sm:$0xff] }
 0x1b7   : > { %2496 = vmatpush.bf16.msra.mxu0 %v3759_v22  ;;  %v3789_v22 = vld [vmem:[%s5042_s5 + $0x3e8] sm:$0xff] }
 0x1b8   : > { %v1310_v26 = vmax.f32 %v1280_v21, 0.0 }
 0x1ba   : > { %2514 = vmatpush.bf16.msra.mxu1 %v3762_v25  ;;  %2488 = vmatpush.bf16.msrb.mxu2 %v3746_v27  ;;  %v3776_v25 = vld [vmem:[%s5042_s5 + $0x380] sm:$0xff] }
 0x1bb   : > { %2497 = vmatpush.bf16.msra.mxu0 %v3758_v28  ;;  %v3768_v27 = vld [vmem:[%s5042_s5 + $0x340] sm:$0xff]  ;;  %v1326_v28 = vpack.c.bf16 %v1310_v26, %v1310_v26 }
 0x1be   : > { %2515 = vmatpush.bf16.msra.mxu1 %v3761_v29  ;;  %2489 = vmatpush.bf16.msrb.mxu2 %v3745_v32  ;;  %v1162_v39 = vpop.f32.mrf.mxu3  ;;  %v3787_v29 = vld [vmem:[%s5042_s5 + $0x3d8] sm:$0xff]  ;;  %v3786_v32 = vld [vmem:[%s5042_s5 + $0x3d0] sm:$0xff] }
 0x1bf   : > { %2498 = vmatpush.bf16.msra.mxu0 %v3757_v33  ;;  %v1163_v42 = vadd.f32 %v1162_v39, %v1058_v34  ;;  %v1068_v33 = vperm.slane %v4795_v35, 7 }
 0x1c1   : > { %v1301_v48 = vmax.f32 %v1163_v42, 0.0  ;;  %v1293_v38 = vadd.f32 %v4804_v9, %v1068_v33  ;;  %v1584_v9 = vld [vmem:[%s5043_s6] sm:$0x1] }
 0x1c2   : > { %2516 = vmatpush.bf16.msra.mxu1 %v3760_v36  ;;  %2490 = vmatpush.bf16.msrb.mxu2 %v3744_v40  ;;  %v3785_v36 = vld [vmem:[%s5042_s5 + $0x3c8] sm:$0xff] }
 0x1c3   : > { %2499 = vmatpush.bf16.msra.mxu0 %v3756_v41  ;;  %v1317_v51 = vpack.c.bf16 %v1301_v48, %v1301_v48  ;;  %v1311_v39 = vmax.f32 %v1293_v38, 0.0 }
 0x1c5   : > { %2517 = vmatmul.bf16.vlgmr.msra.gmra.mxu1 %v1324_v47  ;;  %2426 = vmatmul.bf16.vlgmr.msra.gmra.mxu3 %v1317_v51  ;;  %v1327_v40 = vpack.c.bf16 %v1311_v39, %v1311_v39 }
 0x1c6   : > { %2535 = vmatpush.bf16.msra.mxu2 %v3783_v43  ;;  %2452 = vmatmul.bf16.vlgmr.msrb.gmra.mxu0 %v1319_v50  ;;  %v1164_v54 = vpop.f32.mrf.mxu3 }
 0x1c7   : > { %2491 = vmatmul.bf16.vlgmr.msrb.gmra.mxu2 %v1322_v53  ;;  %2500 = vmatpush.bf16.msra.mxu0 %v3755_v49 }
 0x1c8   : > { %2522 = vmatpush.bf16.msra.mxu3 %v3775_v55 }
 0x1ca   : > { %2536 = vmatpush.bf16.msra.mxu2 %v3782_v52 }
 0x1cb   : > { %2501 = vmatpush.bf16.msra.mxu0 %v3754_v56 }
 0x1cc   : > { %2523 = vmatpush.bf16.msra.mxu3 %v3774_v59 }
 0x1ce   : > { %2537 = vmatpush.bf16.msra.mxu2 %v3781_v61  ;;  %v1214_v4 = vpop.f32.mrf.mxu3 }
 0x1cf   : > { %2502 = vmatpush.bf16.msra.mxu0 %v3753_v62  ;;  %v1215_v17 = vadd.f32 %v1214_v4, %v1062_v2 }
 0x1d0   : > { %2524 = vmatpush.bf16.msra.mxu3 %v3773_v57 }
 0x1d1   : > { %v1305_v7 = vmax.f32 %v1215_v17, 0.0 }
 0x1d2   : > { %2538 = vmatpush.bf16.msra.mxu2 %v3780_v3 }
 0x1d3   : > { %2503 = vmatpush.bf16.msra.mxu0 %v3752_v5  ;;  %v1321_v10 = vpack.c.bf16 %v1305_v7, %v1305_v7 }
 0x1d4   : > { %2525 = vmatpush.bf16.msra.mxu3 %v3772_v6 }
 0x1d5   : > { %2478 = vmatmul.bf16.vlgmr.msrb.gmra.mxu3 %v1321_v10 }
 0x1d6   : > { %2539 = vmatpush.bf16.msra.mxu2 %v3779_v60  ;;  %2504 = vmatmul.bf16.vlgmr.msra.gmra.mxu0 %v1323_v8  ;;  %v1216_v16 = vpop.f32.mrf.mxu3 }
 0x1d7   : > { %2548 = vmatpush.bf16.msrb.mxu0 %v3791_v0 }
 0x1d8   : > { %2526 = vmatpush.bf16.msra.mxu3 %v3771_v11 }
 0x1da   : > { %2540 = vmatpush.bf16.msra.mxu2 %v3778_v13 }
 0x1db   : > { %2549 = vmatpush.bf16.msrb.mxu0 %v3790_v15 }
 0x1dc   : > { %2527 = vmatpush.bf16.msra.mxu3 %v3770_v19 }
 0x1de   : > { %2541 = vmatpush.bf16.msra.mxu2 %v3777_v20  ;;  %v1266_v45 = vpop.f32.mrf.mxu3 }
 0x1df   : > { %2550 = vmatpush.bf16.msrb.mxu0 %v3789_v22  ;;  %v1267_v37 = vadd.f32 %v1266_v45, %v1066_v23 }
 0x1e0   : > { %2528 = vmatpush.bf16.msra.mxu3 %v3769_v24 }
 0x1e1   : > { %v1309_v30 = vmax.f32 %v1267_v37, 0.0 }
 0x1e2   : > { %2542 = vmatpush.bf16.msra.mxu2 %v3776_v25 }
 0x1e3   : > { %2551 = vmatpush.bf16.msrb.mxu0 %v3788_v12  ;;  %v1325_v31 = vpack.c.bf16 %v1309_v30, %v1309_v30 }
 0x1e4   : > { %2529 = vmatpush.bf16.msra.mxu3 %v3768_v27 }
 0x1e5   : > { %2543 = vmatmul.bf16.vlgmr.msra.gmra.mxu2 %v1326_v28 }
 0x1e6   : > { %v1268_v34 = vpop.f32.mrf.mxu3 }
 0x1e7   : > { %2552 = vmatpush.bf16.msrb.mxu0 %v3787_v29  ;;  %2530 = vmatmul.bf16.vlgmr.msra.gmra.mxu3 %v1325_v31 }
 0x1eb   : > { %2553 = vmatpush.bf16.msrb.mxu0 %v3786_v32 }
 0x1ef   : > { %2554 = vmatpush.bf16.msrb.mxu0 %v3785_v36 }
 0x1f3   : > { %2555 = vmatpush.bf16.msrb.mxu0 %v3784_v18 }
 0x1f6   : > { %2556 = vmatmul.bf16.vlgmr.msrb.gmra.mxu0 %v1327_v40 }
 0x202   : > { %v2362_v41 = vpop.f32.mrf.mxu1 }
 0x203   : > { %v2363_v50 = vadd.f32 %v2362_v41, %v1584_v9 }
 0x20a   : > { %v2364_v35 = vpop.f32.mrf.mxu1 }
 0x212   : > { %v2414_v44 = vpop.f32.mrf.mxu1 }
 0x218   : > { %v2375_v42 = vpop.f32.mrf.mxu3 }
 0x219   : > { %v2376_v51 = vadd.f32 %v2375_v42, %v2363_v50 }
 0x21a   : > { %v2416_v43 = vpop.f32.mrf.mxu1 }
 0x220   : > { %v2377_v46 = vpop.f32.mrf.mxu3 }
 0x222   : > { %v2466_v47 = vpop.f32.mrf.mxu1 }
 0x228   : > { %v2388_v48 = vpop.f32.mrf.mxu2 }
 0x229   : > { %v2389_v52 = vadd.f32 %v2388_v48, %v2376_v51 }
 0x22a   : > { %v2468_v49 = vpop.f32.mrf.mxu1 }
 0x230   : > { %v2390_v55 = vpop.f32.mrf.mxu2 }
 0x232   : > { %v2401_v53 = vpop.f32.mrf.mxu0 }
 0x233   : > { %v2402_v54 = vadd.f32 %v2401_v53, %v2389_v52 }
 0x235   : > { %v2415_v56 = vadd.f32 %v2414_v44, %v2402_v54 }
 0x238   : > { %v2440_v58 = vpop.f32.mrf.mxu2 }
 0x23a   : > { %v2403_v59 = vpop.f32.mrf.mxu0 }
 0x240   : > { %v2442_v62 = vpop.f32.mrf.mxu2 }
 0x242   : > { %v2518_v61 = vpop.f32.mrf.mxu1 }
 0x243   : > { %v2453_v1 = vpop.f32.mrf.mxu0 }
 0x248   : > { %v2427_v57 = vpop.f32.mrf.mxu3 }
 0x249   : > { %v2428_v3 = vadd.f32 %v2427_v57, %v2415_v56 }
 0x24a   : > { %v2520_v2 = vpop.f32.mrf.mxu1  ;;  %v2492_v4 = vpop.f32.mrf.mxu2 }
 0x24b   : > { %v2455_v5 = vpop.f32.mrf.mxu0  ;;  %v2441_v63 = vadd.f32 %v2440_v58, %v2428_v3 }
 0x24d   : > { %v2454_v17 = vadd.f32 %v2453_v1, %v2441_v63 }
 0x24f   : > { %v2467_v6 = vadd.f32 %v2466_v47, %v2454_v17 }
 0x250   : > { %v2429_v60 = vpop.f32.mrf.mxu3 }
 0x252   : > { %v2494_v0 = vpop.f32.mrf.mxu2 }
 0x253   : > { %v2505_v7 = vpop.f32.mrf.mxu0 }
 0x258   : > { %v2479_v8 = vpop.f32.mrf.mxu3 }
 0x259   : > { %v2480_v11 = vadd.f32 %v2479_v8, %v2467_v6 }
 0x25b   : > { %v2507_v10 = vpop.f32.mrf.mxu0  ;;  %v2493_v14 = vadd.f32 %v2492_v4, %v2480_v11 }
 0x25d   : > { %v2506_v16 = vadd.f32 %v2505_v7, %v2493_v14 }
 0x25f   : > { %v2519_v19 = vadd.f32 %v2518_v61, %v2506_v16 }
 0x260   : > { %v2481_v13 = vpop.f32.mrf.mxu3 }
 0x268   : > { %v2544_v15 = vpop.f32.mrf.mxu2 }
 0x26a   : > { %v2531_v20 = vpop.f32.mrf.mxu3 }
 0x26b   : > { %v2532_v21 = vadd.f32 %v2531_v20, %v2519_v19 }
 0x26d   : > { %v2545_v23 = vadd.f32 %v2544_v15, %v2532_v21 }
 0x270   : > { %v2546_v22 = vpop.f32.mrf.mxu2 }
 0x272   : > { %v2533_v26 = vpop.f32.mrf.mxu3 }
 0x273   : > { %v2557_v24 = vpop.f32.mrf.mxu0 }
 0x274   : > { %v2558_v25 = vadd.f32 %v2557_v24, %v2545_v23 }
 0x276   : > { %2561 = vst [vmem:[%s308_s21] sm:$0x1] %v2558_v25 }
 0x277   : > { %3876 = shalt.err (!%p3873_p5)
}
 0x278   : > { %3793 = dma.vmem_to_hbm [thread:$0]  (%p4009_p4), %s2575_s23, 16, %s2577_s30, %s2563_s8  }
 0x27b   : > { %v2559_v12 = vpop.f32.mrf.mxu0 }
 0x27c PF: > { %p3799_p6 = scmp.ge.s32.totalorder %s3927_s29, 2  ;;  %s2588_s18 = sand.u32 1, %s3907_s24  }
 0x27d   : > { %s2589_s19 = scalar_lea.sflag [#allocation3], %s2588_s18 }
 0x27e   : > { %p3796_p7 = pnand %p3799_p6, %p4016_p8 }
 0x280   : > { %p3797_p9 = pneg %p3796_p7 }
 0x282   : > { %3902 = dma.done.wait (%p3797_p9), %s2589_s19, 16  }
 0x283   : > { %3904 = vsyncadd (%p3797_p9), %s2589_s19, 4294967280  ;;  %s20_s29 = sadd.s32 1, %s3927_s29   ;;  %s5047_s24 = smov %s3911_s25 }
 0x284   : > { %p17_p10 = scmp.ge.s32.totalorder %s20_s29, 4   ;;  %s5048_s25 = smov %s3915_s26 }
 0x285   : > { %s5049_s26 = smov %s4022_s14  ;;  %s5050_s27 = smov %s3923_s28 }
 0x286   : > { %s5051_s28 = smov %s5053_s9  ;;  %19 = sbr.rel (!%p17_p10) target bundleno = 4 (0x4), region = 89 }
 0x28b   :  { %2594 = vsyncpa [#allocation3], 1 }
 0x28c   :  { %2596 = vsyncpa [#allocation3 + $0x1], 1 }

</bundles_post_ra>
